<compile_context>
chip_gen: v6e
topology: v6e:2x2x1
jax: 0.10.0
libtpu: 0.0.40
codegen_flags: <defaults>
</compile_context>

<pallas_src>
import numpy as np

import jax
import jax.numpy as jnp
from jax import lax
from jax.experimental import pallas as pl
from jax.experimental.pallas import tpu as pltpu

EPS = 1e-5  # BatchNorm1d default eps


def _round_up(n, m):
    return ((n + m - 1) // m) * m


# ----------------------------- in-kernel helpers ---------------------------- #

def _bn_relu_feat(y, gamma, beta):
    # Training-mode BatchNorm1d on a (B, F) activation: per-feature stats over the
    # batch, biased variance, fused scale/shift, ReLU.  All f32.
    inv_n = 1.0 / y.shape[0]
    mean = jnp.sum(y, axis=0, keepdims=True) * inv_n
    var = jnp.sum(y * y, axis=0, keepdims=True) * inv_n - mean * mean
    var = jnp.maximum(var, 0.0)                      # guard fp cancellation
    scale = gamma * lax.rsqrt(var + EPS)             # exact rsqrt (B=2 stats)
    shift = beta - mean * scale
    return jnp.maximum(y * scale + shift, 0.0)


def _bn_relu_chan(y, gamma, beta, pool, pool_t):
    # Training-mode BatchNorm1d on a conv activation stored flat as (B, L*C) in
    # (l, c) order: per-channel stats over batch AND length.  `pool` is the 0/1
    # (L*C, C) channel-pooling matrix, `pool_t` its (C, L*C) transpose.
    # Fused: one dot for [y; y^2] stats, one dot for the [scale; shift] broadcast.
    b = y.shape[0]
    n_ch = pool.shape[1]
    inv_n = 1.0 / (b * (y.shape[1] // n_ch))
    ys = jnp.concatenate([y, y * y], axis=0)                        # (2B, L*C)
    s = jnp.dot(ys, pool, preferred_element_type=jnp.float32)       # (2B, C)
    mean = jnp.sum(s[:b], axis=0, keepdims=True) * inv_n            # (1, C)
    var = jnp.sum(s[b:], axis=0, keepdims=True) * inv_n - mean * mean
    var = jnp.maximum(var, 0.0)
    scale_c = gamma * lax.rsqrt(var + EPS)                          # (1, C)
    shift_c = beta - mean * scale_c
    ss = jnp.dot(jnp.concatenate([scale_c, shift_c], axis=0), pool_t,
                 preferred_element_type=jnp.float32)                # (2, L*C)
    return jnp.maximum(y * ss[0:1] + ss[1:2], 0.0)


def _dot_bf16(h, w_bf16):
    # bf16 operands on the MXU, f32 accumulation.  BN math stays f32 elsewhere.
    return jnp.dot(h.astype(jnp.bfloat16), w_bf16,
                   preferred_element_type=jnp.float32)


def _make_kernel(plan):
    lin_plan, conv_plan, fin_plan = plan["lin"], plan["conv"], plan["final"]

    def kernel(x_ref, wh_ref, alast_hbm, sp_ref, sg_ref, o_ref, alast_buf, alast_sem):
        # Prefetch the single largest weight (last conv fold matrix) from HBM while
        # the linear stack + earlier conv layers compute.
        cp = pltpu.make_async_copy(alast_hbm, alast_buf, alast_sem)
        cp.start()

        def gb(seg):
            c0, c1 = seg
            return sg_ref[0:1, c0:c1], sg_ref[1:2, c0:c1]

        h = x_ref[...]

        # linear_layers: Linear (bias folded away by BN) -> BN -> ReLU
        for spec in lin_plan:
            r0, r1, c0, c1 = spec["w"]
            g, b = gb(spec["g"])
            h = _bn_relu_feat(_dot_bf16(h, wh_ref[r0:r1, c0:c1]), g, b)

        # conv_layers: dense-folded Conv1d matmul -> per-channel BN -> ReLU
        for spec in conv_plan:
            g, b = gb(spec["g"])
            pr0, pr1, pc0, pc1 = spec["pool"]
            tr0, tr1, tc0, tc1 = spec["pool_t"]
            if spec["w"] is None:
                cp.wait()                      # last conv: prefetched matrix
                w = alast_buf[...]
            else:
                r0, r1, c0, c1 = spec["w"]
                w = wh_ref[r0:r1, c0:c1]
            y = _dot_bf16(h, w)
            h = _bn_relu_chan(y, g, b,
                              sp_ref[pr0:pr1, pc0:pc1],
                              sg_ref[tr0:tr1, tc0:tc1])

        # final: Linear (weight pre-permuted for torch's (C, L) flatten, kept f32,
        # lane-packed next to the last pool in SP) -> BN -> ReLU
        r0, r1, c0, c1 = fin_plan["w"]
        g, b = gb(fin_plan["g"])
        y = jnp.dot(h, sp_ref[r0:r1, c0:c1], preferred_element_type=jnp.float32)
        o_ref[...] = _bn_relu_feat(y, g, b)

    return kernel


# ----------------------------- parameter packing ---------------------------- #

def init_params(key, *, num_layers, input_dim, hidden, conv_channels, output_dim):
    assert num_layers >= 1 and len(conv_channels) >= 2
    keys = iter(jax.random.split(key, num_layers + len(conv_channels) + 2))

    # ---- raw parameters with the PyTorch structure folded at init ----
    lin_ws = []
    din = input_dim
    for _ in range(num_layers):
        lin_ws.append(np.asarray(
            0.1 * jax.random.normal(next(keys), (din, hidden), jnp.float32)))
        din = hidden

    conv_as, pools, pool_ts, chans = [], [], [], []
    lin_len = hidden
    for i in range(len(conv_channels) - 1):
        cin, cout = conv_channels[i], conv_channels[i + 1]
        lout = lin_len + 1                      # k=2, padding=1 -> Lout = Lin + 1
        w_t = np.asarray(
            0.1 * jax.random.normal(next(keys), (cout, cin, 2), jnp.float32))
        # TODO(synk): dense fold is O(L^2*Cin*Cout); replace with per-tap (Cin,Cout)
        #             matmuls on rolled activations if the model ever scales up (v7x VMEM).
        a = np.zeros((lin_len * cin, lout * cout), np.float32)
        for l in range(lout):
            for k in range(2):
                m = l + k - 1                   # input position hit by tap k (pad=1)
                if 0 <= m < lin_len:
                    a[m * cin:(m + 1) * cin, l * cout:(l + 1) * cout] += w_t[:, :, k].T
        pool = np.zeros((lout * cout, cout), np.float32)
        for l in range(lout):
            pool[l * cout:(l + 1) * cout, :] = np.eye(cout, dtype=np.float32)
        conv_as.append(a)
        pools.append(pool)
        pool_ts.append(np.ascontiguousarray(pool.T))
        chans.append(cout)
        lin_len = lout

    c_last = conv_channels[-1]
    flat_dim = c_last * lin_len
    wf_t = np.asarray(
        0.1 * jax.random.normal(next(keys), (output_dim, flat_dim), jnp.float32))
    w_final = np.empty((flat_dim, output_dim), np.float32)
    for l in range(lin_len):
        for c in range(c_last):
            w_final[l * c_last + c, :] = wf_t[:, c * lin_len + l]  # fold torch flatten

    n_conv = len(conv_as)

    # ---- slab WH (bf16): all matmul weights except the last conv fold ----
    head_mats = lin_ws + conv_as[:-1]
    wh_width = max(m.shape[1] for m in head_mats)
    head_loc, row = [], 0
    for m in head_mats:
        head_loc.append((row, row + m.shape[0], 0, m.shape[1]))
        row = _round_up(row + m.shape[0], 16)   # bf16 sublane-pair alignment
    wh = np.zeros((row, wh_width), np.float32)
    for (r0, r1, c0, c1), m in zip(head_loc, head_mats):
        wh[r0:r1, c0:c1] = m

    # ---- slab SP (f32): pools + final weight, narrow columns lane-packed ----
    sp_width = max([c_last + output_dim] + [p.shape[1] for p in pools[:-1]])
    pool_loc = [None] * n_conv
    pool_loc[-1] = (0, flat_dim, 0, c_last)
    wf_loc = (0, flat_dim, c_last, c_last + output_dim)
    row = _round_up(flat_dim, 8)
    for i in range(n_conv - 1):
        p = pools[i]
        pool_loc[i] = (row, row + p.shape[0], 0, p.shape[1])
        row = _round_up(row + p.shape[0], 8)
    sp_height = max(loc[1] for loc in pool_loc)
    sp = np.zeros((sp_height, sp_width), np.float32)
    sp[:flat_dim, 0:c_last] = pools[-1]
    sp[:flat_dim, c_last:c_last + output_dim] = w_final
    for i in range(n_conv - 1):
        r0, r1, c0, c1 = pool_loc[i]
        sp[r0:r1, c0:c1] = pools[i]

    # ---- slab SG (f32): gamma row, beta row, pool transposes ----
    widths = [hidden] * num_layers + chans + [output_dim]
    g_segs, col = [], 0
    for w in widths:
        g_segs.append((col, col + w))
        col = _round_up(col + w, 8)
    sg_width = max([col] + [pt.shape[1] for pt in pool_ts])
    pt_loc, row = [], 8                         # rows 0/1 = gamma/beta, next block at 8
    for pt in pool_ts:
        pt_loc.append((row, row + pt.shape[0], 0, pt.shape[1]))
        row = _round_up(row + pt.shape[0], 8)
    sg = np.zeros((row, sg_width), np.float32)
    for c0, c1 in g_segs:
        sg[0, c0:c1] = 1.0                      # BatchNorm1d default gamma
    # row 1 (beta) stays zero                   # BatchNorm1d default beta
    for (r0, r1, c0, c1), pt in zip(pt_loc, pool_ts):
        sg[r0:r1, c0:c1] = pt

    plan = {
        "lin": [{"w": head_loc[i], "g": g_segs[i]} for i in range(num_layers)],
        "conv": [{"w": head_loc[num_layers + i] if i < n_conv - 1 else None,
                  "g": g_segs[num_layers + i],
                  "pool": pool_loc[i],
                  "pool_t": pt_loc[i]} for i in range(n_conv)],
        "final": {"w": wf_loc, "g": g_segs[num_layers + n_conv]},
        "out_dim": output_dim,
        "a_last_shape": tuple(conv_as[-1].shape),
    }
    arrays = {
        "wh": jnp.asarray(wh, dtype=jnp.bfloat16),
        "a_last": jnp.asarray(conv_as[-1], dtype=jnp.bfloat16),
        "sp": jnp.asarray(sp),
        "sg": jnp.asarray(sg),
    }
    return arrays, plan


# --------------------------------- forward ---------------------------------- #

def make_forward(plan):
    kernel = _make_kernel(plan)
    out_dim = plan["out_dim"]
    a_shape = plan["a_last_shape"]

    @jax.jit
    def forward(arrays, x):
        return pl.pallas_call(
            kernel,
            out_shape=jax.ShapeDtypeStruct((x.shape[0], out_dim), jnp.float32),
            in_specs=[
                pl.BlockSpec(memory_space=pltpu.MemorySpace.VMEM),   # x
                pl.BlockSpec(memory_space=pltpu.MemorySpace.VMEM),   # WH slab (bf16)
                pl.BlockSpec(memory_space=pl.ANY),                   # last conv matrix (HBM)
                pl.BlockSpec(memory_space=pltpu.MemorySpace.VMEM),   # SP slab (pools + Wf)
                pl.BlockSpec(memory_space=pltpu.MemorySpace.VMEM),   # SG slab (gamma/beta/pool_t)
            ],
            out_specs=pl.BlockSpec(memory_space=pltpu.MemorySpace.VMEM),
            scratch_shapes=[
                pltpu.VMEM(a_shape, jnp.bfloat16),                   # prefetch destination
                pltpu.SemaphoreType.DMA,
            ],
        )(x, arrays["wh"], arrays["a_last"], arrays["sp"], arrays["sg"])

    return forward


if __name__ == "__main__":
    # args
    NUM_LAYERS = 2
    INPUT_DIM = 16
    HIDDEN = 32
    CONV_CHANNELS = [1, 4, 8]   # num_conv_layers = 3 -> 2 Conv1d layers
    BATCH = 2
    OUTPUT_DIM = 8

    key = jax.random.PRNGKey(0)
    k_x, k_p = jax.random.split(key)
    x = jax.random.normal(k_x, (BATCH, INPUT_DIM), jnp.float32)

    arrays, plan = init_params(
        k_p,
        num_layers=NUM_LAYERS,
        input_dim=INPUT_DIM,
        hidden=HIDDEN,
        conv_channels=CONV_CHANNELS,
        output_dim=OUTPUT_DIM,
    )

    forward = make_forward(plan)
    out = jax.block_until_ready(forward(arrays, x))
    assert out.shape == (BATCH, OUTPUT_DIM)
    assert bool(jnp.all(jnp.isfinite(out)))
    print("KERNEL_OK")
</pallas_src>

<mosaic_0001>
module attributes {stable_mosaic.version = 11 : i64} {
  func.func @kernel(%arg0: memref<2x16xf32, #tpu.memory_space<vmem>>, %arg1: memref<80x132xbf16, #tpu.memory_space<vmem>>, %arg2: memref<132x272xbf16, #tpu.memory_space<any>>, %arg3: memref<404x16xf32, #tpu.memory_space<vmem>>, %arg4: memref<24x272xf32, #tpu.memory_space<vmem>>, %arg5: memref<2x8xf32, #tpu.memory_space<vmem>>, %arg6: memref<132x272xbf16, #tpu.memory_space<vmem>>, %arg7: memref<!tpu.dma_semaphore, #tpu.memory_space<semaphore_mem>>) attributes {dimension_semantics = [], scalar_prefetch = 0 : i64, scratch_operands = 2 : i64, tpu.core_type = #tpu.core_type<tc>} {
    tpu.enqueue_dma source(%arg2 : memref<132x272xbf16, #tpu.memory_space<any>>) target(%arg6 : memref<132x272xbf16, #tpu.memory_space<vmem>>) target_semaphore(%arg7 : memref<!tpu.dma_semaphore, #tpu.memory_space<semaphore_mem>>)
    %c0 = arith.constant 0 : index
    %c0_0 = arith.constant 0 : index
    %0 = vector.load %arg0[%c0, %c0_0] : memref<2x16xf32, #tpu.memory_space<vmem>>, vector<2x16xf32>
    %c0_1 = arith.constant 0 : index
    %c0_2 = arith.constant 0 : index
    %1 = vector.load %arg4[%c0_1, %c0_2] : memref<24x272xf32, #tpu.memory_space<vmem>>, vector<1x32xf32>
    %c1 = arith.constant 1 : index
    %c0_3 = arith.constant 0 : index
    %2 = vector.load %arg4[%c1, %c0_3] : memref<24x272xf32, #tpu.memory_space<vmem>>, vector<1x32xf32>
    %c0_4 = arith.constant 0 : index
    %c0_5 = arith.constant 0 : index
    %3 = vector.load %arg1[%c0_4, %c0_5] : memref<80x132xbf16, #tpu.memory_space<vmem>>, vector<16x32xbf16>
    %4 = arith.truncf %0 : vector<2x16xf32> to vector<2x16xbf16>
    %cst = arith.constant dense<0.000000e+00> : vector<2x32xf32>
    %5 = tpu.matmul %4, %3, %cst {dimension_numbers = #tpu.dot_dimension_numbers<[1], [0], [0], [1], [0, 0, 1, 1], [], []>} : vector<2x16xbf16>, vector<16x32xbf16>, vector<2x32xf32> -> vector<2x32xf32>
    %cst_6 = arith.constant dense<0.000000e+00> : vector<32xf32>
    %6 = vector.multi_reduction <add>, %5, %cst_6 [0] : vector<2x32xf32> to vector<32xf32>
    %7 = vector.shape_cast %6 : vector<32xf32> to vector<1x32xf32>
    %cst_7 = arith.constant 5.000000e-01 : f32
    %8 = vector.broadcast %cst_7 : f32 to vector<1x32xf32>
    %9 = arith.mulf %7, %8 : vector<1x32xf32>
    %10 = arith.mulf %5, %5 : vector<2x32xf32>
    %cst_8 = arith.constant dense<0.000000e+00> : vector<32xf32>
    %11 = vector.multi_reduction <add>, %10, %cst_8 [0] : vector<2x32xf32> to vector<32xf32>
    %12 = vector.shape_cast %11 : vector<32xf32> to vector<1x32xf32>
    %cst_9 = arith.constant 5.000000e-01 : f32
    %13 = vector.broadcast %cst_9 : f32 to vector<1x32xf32>
    %14 = arith.mulf %12, %13 : vector<1x32xf32>
    %15 = arith.mulf %9, %9 : vector<1x32xf32>
    %16 = arith.subf %14, %15 : vector<1x32xf32>
    %cst_10 = arith.constant 0.000000e+00 : f32
    %17 = vector.broadcast %cst_10 : f32 to vector<1x32xf32>
    %18 = arith.maximumf %16, %17 : vector<1x32xf32>
    %cst_11 = arith.constant 9.99999974E-6 : f32
    %19 = vector.broadcast %cst_11 : f32 to vector<1x32xf32>
    %20 = arith.addf %18, %19 : vector<1x32xf32>
    %21 = math.rsqrt %20 : vector<1x32xf32>
    %22 = arith.mulf %1, %21 : vector<1x32xf32>
    %23 = arith.mulf %9, %22 : vector<1x32xf32>
    %24 = arith.subf %2, %23 : vector<1x32xf32>
    %25 = vector.broadcast %22 : vector<1x32xf32> to vector<2x32xf32>
    %26 = arith.mulf %5, %25 : vector<2x32xf32>
    %27 = vector.broadcast %24 : vector<1x32xf32> to vector<2x32xf32>
    %28 = arith.addf %26, %27 : vector<2x32xf32>
    %cst_12 = arith.constant 0.000000e+00 : f32
    %29 = vector.broadcast %cst_12 : f32 to vector<2x32xf32>
    %30 = arith.maximumf %28, %29 : vector<2x32xf32>
    %c0_13 = arith.constant 0 : index
    %c32 = arith.constant 32 : index
    %31 = vector.load %arg4[%c0_13, %c32] : memref<24x272xf32, #tpu.memory_space<vmem>>, vector<1x32xf32>
    %c1_14 = arith.constant 1 : index
    %c32_15 = arith.constant 32 : index
    %32 = vector.load %arg4[%c1_14, %c32_15] : memref<24x272xf32, #tpu.memory_space<vmem>>, vector<1x32xf32>
    %c16 = arith.constant 16 : index
    %c0_16 = arith.constant 0 : index
    %33 = vector.load %arg1[%c16, %c0_16] : memref<80x132xbf16, #tpu.memory_space<vmem>>, vector<32x32xbf16>
    %34 = arith.truncf %30 : vector<2x32xf32> to vector<2x32xbf16>
    %cst_17 = arith.constant dense<0.000000e+00> : vector<2x32xf32>
    %35 = tpu.matmul %34, %33, %cst_17 {dimension_numbers = #tpu.dot_dimension_numbers<[1], [0], [0], [1], [0, 0, 1, 1], [], []>} : vector<2x32xbf16>, vector<32x32xbf16>, vector<2x32xf32> -> vector<2x32xf32>
    %cst_18 = arith.constant dense<0.000000e+00> : vector<32xf32>
    %36 = vector.multi_reduction <add>, %35, %cst_18 [0] : vector<2x32xf32> to vector<32xf32>
    %37 = vector.shape_cast %36 : vector<32xf32> to vector<1x32xf32>
    %cst_19 = arith.constant 5.000000e-01 : f32
    %38 = vector.broadcast %cst_19 : f32 to vector<1x32xf32>
    %39 = arith.mulf %37, %38 : vector<1x32xf32>
    %40 = arith.mulf %35, %35 : vector<2x32xf32>
    %cst_20 = arith.constant dense<0.000000e+00> : vector<32xf32>
    %41 = vector.multi_reduction <add>, %40, %cst_20 [0] : vector<2x32xf32> to vector<32xf32>
    %42 = vector.shape_cast %41 : vector<32xf32> to vector<1x32xf32>
    %cst_21 = arith.constant 5.000000e-01 : f32
    %43 = vector.broadcast %cst_21 : f32 to vector<1x32xf32>
    %44 = arith.mulf %42, %43 : vector<1x32xf32>
    %45 = arith.mulf %39, %39 : vector<1x32xf32>
    %46 = arith.subf %44, %45 : vector<1x32xf32>
    %cst_22 = arith.constant 0.000000e+00 : f32
    %47 = vector.broadcast %cst_22 : f32 to vector<1x32xf32>
    %48 = arith.maximumf %46, %47 : vector<1x32xf32>
    %cst_23 = arith.constant 9.99999974E-6 : f32
    %49 = vector.broadcast %cst_23 : f32 to vector<1x32xf32>
    %50 = arith.addf %48, %49 : vector<1x32xf32>
    %51 = math.rsqrt %50 : vector<1x32xf32>
    %52 = arith.mulf %31, %51 : vector<1x32xf32>
    %53 = arith.mulf %39, %52 : vector<1x32xf32>
    %54 = arith.subf %32, %53 : vector<1x32xf32>
    %55 = vector.broadcast %52 : vector<1x32xf32> to vector<2x32xf32>
    %56 = arith.mulf %35, %55 : vector<2x32xf32>
    %57 = vector.broadcast %54 : vector<1x32xf32> to vector<2x32xf32>
    %58 = arith.addf %56, %57 : vector<2x32xf32>
    %cst_24 = arith.constant 0.000000e+00 : f32
    %59 = vector.broadcast %cst_24 : f32 to vector<2x32xf32>
    %60 = arith.maximumf %58, %59 : vector<2x32xf32>
    %c0_25 = arith.constant 0 : index
    %c64 = arith.constant 64 : index
    %61 = vector.load %arg4[%c0_25, %c64] : memref<24x272xf32, #tpu.memory_space<vmem>>, vector<1x4xf32>
    %c1_26 = arith.constant 1 : index
    %c64_27 = arith.constant 64 : index
    %62 = vector.load %arg4[%c1_26, %c64_27] : memref<24x272xf32, #tpu.memory_space<vmem>>, vector<1x4xf32>
    %c48 = arith.constant 48 : index
    %c0_28 = arith.constant 0 : index
    %63 = vector.load %arg1[%c48, %c0_28] : memref<80x132xbf16, #tpu.memory_space<vmem>>, vector<32x132xbf16>
    %64 = arith.truncf %60 : vector<2x32xf32> to vector<2x32xbf16>
    %cst_29 = arith.constant dense<0.000000e+00> : vector<2x132xf32>
    %65 = tpu.matmul %64, %63, %cst_29 {dimension_numbers = #tpu.dot_dimension_numbers<[1], [0], [0], [1], [0, 0, 1, 1], [], []>} : vector<2x32xbf16>, vector<32x132xbf16>, vector<2x132xf32> -> vector<2x132xf32>
    %c272 = arith.constant 272 : index
    %c0_30 = arith.constant 0 : index
    %66 = vector.load %arg3[%c272, %c0_30] : memref<404x16xf32, #tpu.memory_space<vmem>>, vector<132x4xf32>
    %c8 = arith.constant 8 : index
    %c0_31 = arith.constant 0 : index
    %67 = vector.load %arg4[%c8, %c0_31] : memref<24x272xf32, #tpu.memory_space<vmem>>, vector<4x132xf32>
    %68 = arith.mulf %65, %65 : vector<2x132xf32>
    %69 = tpu.concatenate %65, %68 in 0 : vector<2x132xf32>, vector<2x132xf32> -> vector<4x132xf32>
    %cst_32 = arith.constant dense<0.000000e+00> : vector<4x4xf32>
    %70 = tpu.matmul %69, %66, %cst_32 {dimension_numbers = #tpu.dot_dimension_numbers<[1], [0], [0], [1], [0, 0, 1, 1], [], []>} : vector<4x132xf32>, vector<132x4xf32>, vector<4x4xf32> -> vector<4x4xf32>
    %71 = vector.extract_strided_slice %70 {offsets = [0, 0], sizes = [2, 4], strides = [1, 1]} : vector<4x4xf32> to vector<2x4xf32>
    %cst_33 = arith.constant dense<0.000000e+00> : vector<4xf32>
    %72 = vector.multi_reduction <add>, %71, %cst_33 [0] : vector<2x4xf32> to vector<4xf32>
    %73 = vector.shape_cast %72 : vector<4xf32> to vector<1x4xf32>
    %cst_34 = arith.constant 0.0151515156 : f32
    %74 = vector.broadcast %cst_34 : f32 to vector<1x4xf32>
    %75 = arith.mulf %73, %74 : vector<1x4xf32>
    %76 = vector.extract_strided_slice %70 {offsets = [2, 0], sizes = [2, 4], strides = [1, 1]} : vector<4x4xf32> to vector<2x4xf32>
    %cst_35 = arith.constant dense<0.000000e+00> : vector<4xf32>
    %77 = vector.multi_reduction <add>, %76, %cst_35 [0] : vector<2x4xf32> to vector<4xf32>
    %78 = vector.shape_cast %77 : vector<4xf32> to vector<1x4xf32>
    %cst_36 = arith.constant 0.0151515156 : f32
    %79 = vector.broadcast %cst_36 : f32 to vector<1x4xf32>
    %80 = arith.mulf %78, %79 : vector<1x4xf32>
    %81 = arith.mulf %75, %75 : vector<1x4xf32>
    %82 = arith.subf %80, %81 : vector<1x4xf32>
    %cst_37 = arith.constant 0.000000e+00 : f32
    %83 = vector.broadcast %cst_37 : f32 to vector<1x4xf32>
    %84 = arith.maximumf %82, %83 : vector<1x4xf32>
    %cst_38 = arith.constant 9.99999974E-6 : f32
    %85 = vector.broadcast %cst_38 : f32 to vector<1x4xf32>
    %86 = arith.addf %84, %85 : vector<1x4xf32>
    %87 = math.rsqrt %86 : vector<1x4xf32>
    %88 = arith.mulf %61, %87 : vector<1x4xf32>
    %89 = arith.mulf %75, %88 : vector<1x4xf32>
    %90 = arith.subf %62, %89 : vector<1x4xf32>
    %91 = tpu.concatenate %88, %90 in 0 : vector<1x4xf32>, vector<1x4xf32> -> vector<2x4xf32>
    %cst_39 = arith.constant dense<0.000000e+00> : vector<2x132xf32>
    %92 = tpu.matmul %91, %67, %cst_39 {dimension_numbers = #tpu.dot_dimension_numbers<[1], [0], [0], [1], [0, 0, 1, 1], [], []>} : vector<2x4xf32>, vector<4x132xf32>, vector<2x132xf32> -> vector<2x132xf32>
    %93 = vector.extract_strided_slice %92 {offsets = [0, 0], sizes = [1, 132], strides = [1, 1]} : vector<2x132xf32> to vector<1x132xf32>
    %94 = vector.broadcast %93 : vector<1x132xf32> to vector<2x132xf32>
    %95 = arith.mulf %65, %94 : vector<2x132xf32>
    %96 = vector.extract_strided_slice %92 {offsets = [1, 0], sizes = [1, 132], strides = [1, 1]} : vector<2x132xf32> to vector<1x132xf32>
    %97 = vector.broadcast %96 : vector<1x132xf32> to vector<2x132xf32>
    %98 = arith.addf %95, %97 : vector<2x132xf32>
    %cst_40 = arith.constant 0.000000e+00 : f32
    %99 = vector.broadcast %cst_40 : f32 to vector<2x132xf32>
    %100 = arith.maximumf %98, %99 : vector<2x132xf32>
    %c0_41 = arith.constant 0 : index
    %c72 = arith.constant 72 : index
    %101 = vector.load %arg4[%c0_41, %c72] : memref<24x272xf32, #tpu.memory_space<vmem>>, vector<1x8xf32>
    %c1_42 = arith.constant 1 : index
    %c72_43 = arith.constant 72 : index
    %102 = vector.load %arg4[%c1_42, %c72_43] : memref<24x272xf32, #tpu.memory_space<vmem>>, vector<1x8xf32>
    tpu.wait_dma2 semaphore(%arg7 : memref<!tpu.dma_semaphore, #tpu.memory_space<semaphore_mem>>) src(%arg2 : memref<132x272xbf16, #tpu.memory_space<any>>) dst(%arg6 : memref<132x272xbf16, #tpu.memory_space<vmem>>)
    %c0_44 = arith.constant 0 : index
    %c0_45 = arith.constant 0 : index
    %103 = vector.load %arg6[%c0_44, %c0_45] : memref<132x272xbf16, #tpu.memory_space<vmem>>, vector<132x272xbf16>
    %104 = arith.truncf %100 : vector<2x132xf32> to vector<2x132xbf16>
    %cst_46 = arith.constant dense<0.000000e+00> : vector<2x272xf32>
    %105 = tpu.matmul %104, %103, %cst_46 {dimension_numbers = #tpu.dot_dimension_numbers<[1], [0], [0], [1], [0, 0, 1, 1], [], []>} : vector<2x132xbf16>, vector<132x272xbf16>, vector<2x272xf32> -> vector<2x272xf32>
    %c0_47 = arith.constant 0 : index
    %c0_48 = arith.constant 0 : index
    %106 = vector.load %arg3[%c0_47, %c0_48] : memref<404x16xf32, #tpu.memory_space<vmem>>, vector<272x8xf32>
    %c16_49 = arith.constant 16 : index
    %c0_50 = arith.constant 0 : index
    %107 = vector.load %arg4[%c16_49, %c0_50] : memref<24x272xf32, #tpu.memory_space<vmem>>, vector<8x272xf32>
    %108 = arith.mulf %105, %105 : vector<2x272xf32>
    %109 = tpu.concatenate %105, %108 in 0 : vector<2x272xf32>, vector<2x272xf32> -> vector<4x272xf32>
    %cst_51 = arith.constant dense<0.000000e+00> : vector<4x8xf32>
    %110 = tpu.matmul %109, %106, %cst_51 {dimension_numbers = #tpu.dot_dimension_numbers<[1], [0], [0], [1], [0, 0, 1, 1], [], []>} : vector<4x272xf32>, vector<272x8xf32>, vector<4x8xf32> -> vector<4x8xf32>
    %111 = vector.extract_strided_slice %110 {offsets = [0, 0], sizes = [2, 8], strides = [1, 1]} : vector<4x8xf32> to vector<2x8xf32>
    %cst_52 = arith.constant dense<0.000000e+00> : vector<8xf32>
    %112 = vector.multi_reduction <add>, %111, %cst_52 [0] : vector<2x8xf32> to vector<8xf32>
    %113 = vector.shape_cast %112 : vector<8xf32> to vector<1x8xf32>
    %cst_53 = arith.constant 0.0147058824 : f32
    %114 = vector.broadcast %cst_53 : f32 to vector<1x8xf32>
    %115 = arith.mulf %113, %114 : vector<1x8xf32>
    %116 = vector.extract_strided_slice %110 {offsets = [2, 0], sizes = [2, 8], strides = [1, 1]} : vector<4x8xf32> to vector<2x8xf32>
    %cst_54 = arith.constant dense<0.000000e+00> : vector<8xf32>
    %117 = vector.multi_reduction <add>, %116, %cst_54 [0] : vector<2x8xf32> to vector<8xf32>
    %118 = vector.shape_cast %117 : vector<8xf32> to vector<1x8xf32>
    %cst_55 = arith.constant 0.0147058824 : f32
    %119 = vector.broadcast %cst_55 : f32 to vector<1x8xf32>
    %120 = arith.mulf %118, %119 : vector<1x8xf32>
    %121 = arith.mulf %115, %115 : vector<1x8xf32>
    %122 = arith.subf %120, %121 : vector<1x8xf32>
    %cst_56 = arith.constant 0.000000e+00 : f32
    %123 = vector.broadcast %cst_56 : f32 to vector<1x8xf32>
    %124 = arith.maximumf %122, %123 : vector<1x8xf32>
    %cst_57 = arith.constant 9.99999974E-6 : f32
    %125 = vector.broadcast %cst_57 : f32 to vector<1x8xf32>
    %126 = arith.addf %124, %125 : vector<1x8xf32>
    %127 = math.rsqrt %126 : vector<1x8xf32>
    %128 = arith.mulf %101, %127 : vector<1x8xf32>
    %129 = arith.mulf %115, %128 : vector<1x8xf32>
    %130 = arith.subf %102, %129 : vector<1x8xf32>
    %131 = tpu.concatenate %128, %130 in 0 : vector<1x8xf32>, vector<1x8xf32> -> vector<2x8xf32>
    %cst_58 = arith.constant dense<0.000000e+00> : vector<2x272xf32>
    %132 = tpu.matmul %131, %107, %cst_58 {dimension_numbers = #tpu.dot_dimension_numbers<[1], [0], [0], [1], [0, 0, 1, 1], [], []>} : vector<2x8xf32>, vector<8x272xf32>, vector<2x272xf32> -> vector<2x272xf32>
    %133 = vector.extract_strided_slice %132 {offsets = [0, 0], sizes = [1, 272], strides = [1, 1]} : vector<2x272xf32> to vector<1x272xf32>
    %134 = vector.broadcast %133 : vector<1x272xf32> to vector<2x272xf32>
    %135 = arith.mulf %105, %134 : vector<2x272xf32>
    %136 = vector.extract_strided_slice %132 {offsets = [1, 0], sizes = [1, 272], strides = [1, 1]} : vector<2x272xf32> to vector<1x272xf32>
    %137 = vector.broadcast %136 : vector<1x272xf32> to vector<2x272xf32>
    %138 = arith.addf %135, %137 : vector<2x272xf32>
    %cst_59 = arith.constant 0.000000e+00 : f32
    %139 = vector.broadcast %cst_59 : f32 to vector<2x272xf32>
    %140 = arith.maximumf %138, %139 : vector<2x272xf32>
    %c0_60 = arith.constant 0 : index
    %c80 = arith.constant 80 : index
    %141 = vector.load %arg4[%c0_60, %c80] : memref<24x272xf32, #tpu.memory_space<vmem>>, vector<1x8xf32>
    %c1_61 = arith.constant 1 : index
    %c80_62 = arith.constant 80 : index
    %142 = vector.load %arg4[%c1_61, %c80_62] : memref<24x272xf32, #tpu.memory_space<vmem>>, vector<1x8xf32>
    %c0_63 = arith.constant 0 : index
    %c8_64 = arith.constant 8 : index
    %143 = vector.load %arg3[%c0_63, %c8_64] : memref<404x16xf32, #tpu.memory_space<vmem>>, vector<272x8xf32>
    %cst_65 = arith.constant dense<0.000000e+00> : vector<2x8xf32>
    %144 = tpu.matmul %140, %143, %cst_65 {dimension_numbers = #tpu.dot_dimension_numbers<[1], [0], [0], [1], [0, 0, 1, 1], [], []>} : vector<2x272xf32>, vector<272x8xf32>, vector<2x8xf32> -> vector<2x8xf32>
    %cst_66 = arith.constant dense<0.000000e+00> : vector<8xf32>
    %145 = vector.multi_reduction <add>, %144, %cst_66 [0] : vector<2x8xf32> to vector<8xf32>
    %146 = vector.shape_cast %145 : vector<8xf32> to vector<1x8xf32>
    %cst_67 = arith.constant 5.000000e-01 : f32
    %147 = vector.broadcast %cst_67 : f32 to vector<1x8xf32>
    %148 = arith.mulf %146, %147 : vector<1x8xf32>
    %149 = arith.mulf %144, %144 : vector<2x8xf32>
    %cst_68 = arith.constant dense<0.000000e+00> : vector<8xf32>
    %150 = vector.multi_reduction <add>, %149, %cst_68 [0] : vector<2x8xf32> to vector<8xf32>
    %151 = vector.shape_cast %150 : vector<8xf32> to vector<1x8xf32>
    %cst_69 = arith.constant 5.000000e-01 : f32
    %152 = vector.broadcast %cst_69 : f32 to vector<1x8xf32>
    %153 = arith.mulf %151, %152 : vector<1x8xf32>
    %154 = arith.mulf %148, %148 : vector<1x8xf32>
    %155 = arith.subf %153, %154 : vector<1x8xf32>
    %cst_70 = arith.constant 0.000000e+00 : f32
    %156 = vector.broadcast %cst_70 : f32 to vector<1x8xf32>
    %157 = arith.maximumf %155, %156 : vector<1x8xf32>
    %cst_71 = arith.constant 9.99999974E-6 : f32
    %158 = vector.broadcast %cst_71 : f32 to vector<1x8xf32>
    %159 = arith.addf %157, %158 : vector<1x8xf32>
    %160 = math.rsqrt %159 : vector<1x8xf32>
    %161 = arith.mulf %141, %160 : vector<1x8xf32>
    %162 = arith.mulf %148, %161 : vector<1x8xf32>
    %163 = arith.subf %142, %162 : vector<1x8xf32>
    %164 = vector.broadcast %161 : vector<1x8xf32> to vector<2x8xf32>
    %165 = arith.mulf %144, %164 : vector<2x8xf32>
    %166 = vector.broadcast %163 : vector<1x8xf32> to vector<2x8xf32>
    %167 = arith.addf %165, %166 : vector<2x8xf32>
    %cst_72 = arith.constant 0.000000e+00 : f32
    %168 = vector.broadcast %cst_72 : f32 to vector<2x8xf32>
    %169 = arith.maximumf %167, %168 : vector<2x8xf32>
    %c0_73 = arith.constant 0 : index
    %c0_74 = arith.constant 0 : index
    %170 = vector.load %arg5[%c0_73, %c0_74] : memref<2x8xf32, #tpu.memory_space<vmem>>, vector<2x8xf32>
    tpu.vector_store %arg5[%c0_73, %c0_74], %169 {strides = array<i32>} : memref<2x8xf32, #tpu.memory_space<vmem>>, vector<2x8xf32>,
    return
  }
}

</mosaic_0001>

<bundles_post_ra>
// kernel: forward.1
= control target key start
LH: loop header
LB: loop body
LE: loop exit
PB: predicated region body
PF: predicated region fallthrough
CT: control target
= control target key end

     0   :  { %10 = vsyncpa [#allocation5], 0  ;;  %s2623_s0 = inlined_call_operand.vmem [shape: f32[2,16], index: 0, kind: input, shape index: {}]   ;;  %s2624_s1 = inlined_call_operand.vmem [shape: bf16[80,132], index: 1, kind: input, shape index: {}]   ;;  %s2625_s2 = inlined_call_operand.vmem [shape: bf16[132,272], index: 2, kind: input, shape index: {}]   ;;  %s2626_s3 = inlined_call_operand.vmem [shape: f32[404,16], index: 3, kind: input, shape index: {}]   ;;  %s2627_s4 = inlined_call_operand.vmem [shape: f32[24,272], index: 4, kind: input, shape index: {}]   ;;  %s2628_s5 = inlined_call_operand.hbm [shape: f32[2,8], index: 5, kind: output, shape index: {}]  }
   0x1   :  { %v58_v0 = vld [vmem:[%s2625_s2] sm:$0xff]  ;;  %v60_v1 = vld [vmem:[%s2625_s2 + $0x8] sm:$0xff]  ;;  %v62_v2 = vld [vmem:[%s2625_s2 + $0x10] sm:$0xff] }
   0x2   :  { %59 = vst [vmem:[#allocation2] sm:$0xff] %v58_v0  ;;  %61 = vst [vmem:[#allocation2 + $0x8] sm:$0xff] %v60_v1  ;;  %v64_v3 = vld [vmem:[%s2625_s2 + $0x18] sm:$0xff]  ;;  %v66_v4 = vld [vmem:[%s2625_s2 + $0x20] sm:$0xff] }
   0x3   :  { %63 = vst [vmem:[#allocation2 + $0x10] sm:$0xff] %v62_v2  ;;  %65 = vst [vmem:[#allocation2 + $0x18] sm:$0xff] %v64_v3  ;;  %v68_v5 = vld [vmem:[%s2625_s2 + $0x28] sm:$0xff]  ;;  %v70_v6 = vld [vmem:[%s2625_s2 + $0x30] sm:$0xff] }
   0x4   :  { %67 = vst [vmem:[#allocation2 + $0x20] sm:$0xff] %v66_v4  ;;  %v72_v7 = vld [vmem:[%s2625_s2 + $0x38] sm:$0xff]  ;;  %69 = vst [vmem:[#allocation2 + $0x28] sm:$0xff] %v68_v5  ;;  %v74_v8 = vld [vmem:[%s2625_s2 + $0x40] sm:$0xff] }
   0x5   :  { %71 = vst [vmem:[#allocation2 + $0x30] sm:$0xff] %v70_v6  ;;  %73 = vst [vmem:[#allocation2 + $0x38] sm:$0xff] %v72_v7  ;;  %v76_v9 = vld [vmem:[%s2625_s2 + $0x48] sm:$0xff]  ;;  %v78_v10 = vld [vmem:[%s2625_s2 + $0x50] sm:$0xff] }
   0x6   :  { %75 = vst [vmem:[#allocation2 + $0x40] sm:$0xff] %v74_v8  ;;  %77 = vst [vmem:[#allocation2 + $0x48] sm:$0xff] %v76_v9  ;;  %v80_v11 = vld [vmem:[%s2625_s2 + $0x58] sm:$0xff]  ;;  %v82_v12 = vld [vmem:[%s2625_s2 + $0x60] sm:$0xff] }
   0x7   :  { %79 = vst [vmem:[#allocation2 + $0x50] sm:$0xff] %v78_v10  ;;  %v84_v13 = vld [vmem:[%s2625_s2 + $0x68] sm:$0xff]  ;;  %81 = vst [vmem:[#allocation2 + $0x58] sm:$0xff] %v80_v11  ;;  %v86_v14 = vld [vmem:[%s2625_s2 + $0x70] sm:$0xff] }
   0x8   :  { %83 = vst [vmem:[#allocation2 + $0x60] sm:$0xff] %v82_v12  ;;  %85 = vst [vmem:[#allocation2 + $0x68] sm:$0xff] %v84_v13  ;;  %v88_v15 = vld [vmem:[%s2625_s2 + $0x78] sm:$0xff]  ;;  %v90_v16 = vld [vmem:[%s2625_s2 + $0x80] sm:$0xff] }
   0x9   :  { %87 = vst [vmem:[#allocation2 + $0x70] sm:$0xff] %v86_v14  ;;  %89 = vst [vmem:[#allocation2 + $0x78] sm:$0xff] %v88_v15  ;;  %v92_v17 = vld [vmem:[%s2625_s2 + $0x88] sm:$0xff]  ;;  %v94_v18 = vld [vmem:[%s2625_s2 + $0x90] sm:$0xff] }
   0xa   :  { %91 = vst [vmem:[#allocation2 + $0x80] sm:$0xff] %v90_v16  ;;  %v96_v19 = vld [vmem:[%s2625_s2 + $0x98] sm:$0xff]  ;;  %93 = vst [vmem:[#allocation2 + $0x88] sm:$0xff] %v92_v17  ;;  %v98_v20 = vld [vmem:[%s2625_s2 + $0xa0] sm:$0xff] }
   0xb   :  { %95 = vst [vmem:[#allocation2 + $0x90] sm:$0xff] %v94_v18  ;;  %97 = vst [vmem:[#allocation2 + $0x98] sm:$0xff] %v96_v19  ;;  %v100_v21 = vld [vmem:[%s2625_s2 + $0xa8] sm:$0xff]  ;;  %v102_v22 = vld [vmem:[%s2625_s2 + $0xb0] sm:$0xff] }
   0xc   :  { %99 = vst [vmem:[#allocation2 + $0xa0] sm:$0xff] %v98_v20  ;;  %101 = vst [vmem:[#allocation2 + $0xa8] sm:$0xff] %v100_v21  ;;  %v104_v23 = vld [vmem:[%s2625_s2 + $0xb8] sm:$0xff]  ;;  %v106_v24 = vld [vmem:[%s2625_s2 + $0xc0] sm:$0xff] }
   0xd   :  { %103 = vst [vmem:[#allocation2 + $0xb0] sm:$0xff] %v102_v22  ;;  %v1712_v25 = vld [vmem:[%s2625_s2 + $0xc8] sm:$0xf]  ;;  %105 = vst [vmem:[#allocation2 + $0xb8] sm:$0xff] %v104_v23 }
   0xe   :  { %107 = vst [vmem:[#allocation2 + $0xc0] sm:$0xff] %v106_v24  ;;  %119 = vst [vmem:[#allocation2 + $0xc8] sm:$0xf] %v1712_v25 }
   0xf   :  { %123 = vsyncadd [#allocation3], 3264  ;;  %v1969_v26 = vmov 0.0   ;;  %v1891_v27 = vld [vmem:[%s2624_s1] ss:$8 sps:$4 sm:$0xff]   ;;  %vm1970_vm0 = vmmov 0  }
  0x10   :  { %1846 = vmatprep.subr.bf16.mxu0 %v1969_v26  ;;  %1848 = vmatprep.mubr.msk.bf16.mxu0 %vm1970_vm0, %v1969_v26  ;;  %v124_v28 = vld [vmem:[%s2623_s0] sm:$0x3]  ;;  %vm136_vm1 = vcmask 130048   ;;  %v1893_v31 = vld [vmem:[%s2624_s1 + $0x10] ss:$8 sps:$4 sm:$0xff]   ;;  %vm180_vm2 = vcmask 254976  }
  0x11   :  { %v129_v29 = vpack.c.bf16 %v124_v28, %v124_v28  ;;  %433 = vmatprep.subr.mxu1 %v1969_v26  ;;  %1847 = vmatpush3.bf16.msra.mxu0 %v1891_v27  ;;  %v1892_v30 = vld [vmem:[%s2624_s1 + $0x20] ss:$8 sps:$4 sm:$0xff]   ;;  %vm226_vm3 = vcmask 261120   ;;  %s1971_s30 = smov 32   ;;  %s1972_s6 = smov 96   ;;  %vm429_vm4 = vcmask 1043456  }
  0x12   :  { %1852 = vmatprep.subr.bf16.mxu0 %v1969_v26  ;;  %v2115_v57 = vld [vmem:[%s2627_s4] ss:$0 sm:$0xff]  ;;  %v2121_v60 = vld [vmem:[%s2627_s4 + $0x1] ss:$0 sm:$0xff]  ;;  %vm422_vm5 = vcmask 1041408   ;;  %vm425_vm6 = vcmask 31744  }
  0x13   :  { %vm503_vm7 = vcmask 25600   ;;  %vm546_vm8 = vcmask 1040384  }
  0x14   :  { %1849 = vmatmul.mubr.msk.bf16.vlgmr.msra.gmra.mxu0 %vm136_vm1, %v129_v29 }
  0x15   :  { %1856 = vmatprep.mubr.msk.bf16.mxu0 %vm1970_vm0, %v1969_v26  ;;  %1853 = vmatpush3.bf16.msra.mxu0 %v1892_v30 }
  0x16   :  { %1854 = vmatprep.subr.bf16.mxu0 %v1969_v26 }
  0x19   :  { %1855 = vmatpush3.bf16.msra.mxu0 %v1893_v31 }
  0xd4   :  { %v174_v32 = vpop.f32.mrf.mxu0 }
  0xd5   :  { %v181_v33 = vsel %vm180_vm2, %v174_v32, 0.0  ;;  %v189_v34 = vmul.f32 %v174_v32, %v174_v32 }
  0xd6   :  { %v182_v35 = vrot.slane %v181_v33, 4  ;;  %v1850_v36 = vpop.f32.mrf.mxu0 }
  0xd7   :  { %v190_v37 = vsel %vm180_vm2, %v189_v34, 0.0  ;;  %v1896_v34 = vld [vmem:[%s2624_s1 + $0x44] ss:$8 sps:$4 sm:$0xff]  }
  0xd8   :  { %v183_v38 = vadd.f32 %v182_v35, %v181_v33  ;;  %v191_v39 = vrot.slane %v190_v37, 4  ;;  %v177_v40 = vpop.f32.mrf.mxu0  ;;  %v1894_v33 = vld [vmem:[%s2624_s1 + $0x40] ss:$8 sps:$4 sm:$0xff]   ;;  %366 = vmatprep.subr.bf16.mxu0 %v1896_v34 }
  0xd9   :  { %v1899_v40 = vld [vmem:[%s2624_s1 + $0x34] ss:$8 sps:$4 sm:$0xff]  }
  0xda   :  { %v184_v41 = vrot.slane %v183_v38, 2  ;;  %v192_v42 = vadd.f32 %v191_v39, %v190_v37  ;;  %v1851_v43 = vpop.f32.mrf.mxu0 }
  0xdb   :  { %v410_v43 = vld [vmem:[%s2626_s3 + $0x188] sm:$0xff] }
  0xdc   :  { %v185_v44 = vadd.f32 %v184_v41, %v183_v38  ;;  %v193_v45 = vrot.slane %v192_v42, 2  ;;  %v1897_v41 = vld [vmem:[%s2624_s1 + $0x30] ss:$8 sps:$4 sm:$0xff]   ;;  %434 = vmatpush1.msra.mxu1 %v410_v43  ;;  %s1974_s1 = smov 64  }
  0xdd   :  { %435 = vmatprep.subr.mxu1 %v1969_v26 }
  0xde   :  { %v186_v46 = vrot.slane %v185_v44, 1  ;;  %v194_v47 = vadd.f32 %v193_v45, %v192_v42  ;;  %v1973_v42 = vmov 0  }
  0xe0   :  { %v187_v48 = vadd.f32 %v186_v46, %v185_v44  ;;  %v195_v49 = vrot.slane %v194_v47, 1  ;;  %v409_v44 = vld [vmem:[%s2626_s3 + $0x180] sm:$0xff]  ;;  %v408_v46 = vld [vmem:[%s2626_s3 + $0x178] sm:$0xff] }
  0xe1   :  { %436 = vmatpush1.msra.mxu1 %v409_v44 }
  0xe2   :  { %v188_v50 = vmul.f32 0.5, %v187_v48  ;;  %v196_v51 = vadd.f32 %v195_v49, %v194_v47  ;;  %437 = vmatprep.subr.mxu1 %v1969_v26  ;;  %v407_v48 = vld [vmem:[%s2626_s3 + $0x170] sm:$0xff] }
  0xe3   :  { %438 = vmatpush1.msra.mxu1 %v408_v46 }
  0xe4   :  { %v197_v52 = vmul.f32 0.5, %v196_v51  ;;  %v198_v53 = vmul.f32 %v188_v50, %v188_v50  ;;  %439 = vmatprep.subr.mxu1 %v1969_v26  ;;  %v405_v51 = vld [vmem:[%s2626_s3 + $0x160] sm:$0xff] }
  0xe5   :  { %440 = vmatpush1.msra.mxu1 %v407_v48  ;;  %v412_v48 = vld [vmem:[%s2627_s4 + $0x18] sm:$0xf] }
  0xe6   :  { %v199_v54 = vsub.f32 %v197_v52, %v198_v53  ;;  %441 = vmatprep.subr.mxu1 %v1969_v26  ;;  %v404_v52 = vld [vmem:[%s2626_s3 + $0x158] sm:$0xff]  ;;  %v403_v53 = vld [vmem:[%s2626_s3 + $0x150] sm:$0xff] }
  0xe8   :  { %v200_v55 = vmax.f32 %v199_v54, 0.0  ;;  %v402_v54 = vld [vmem:[%s2626_s3 + $0x148] sm:$0xff] }
  0xea   :  { %v201_v56 = vadd.f32 1e-05, %v200_v55  ;;  %v401_v55 = vld [vmem:[%s2626_s3 + $0x140] sm:$0xff] }
  0xec   :  { %1900 = vrsqrt.f32 %v201_v56  ;;  %v400_v56 = vld [vmem:[%s2626_s3 + $0x138] sm:$0xff] }
  0xf9   :  { %v1901_v58 = vpop.eup %1900 }
  0xfa   :  { %v203_v59 = vmul.f32 %v1901_v58, %v2115_v57  ;;  %v399_v58 = vld [vmem:[%s2626_s3 + $0x130] sm:$0xff] }
  0xfc   :  { %v204_v61 = vmul.f32 %v203_v59, %v188_v50  ;;  %v206_v63 = vmul.f32 %v203_v59, %v174_v32  ;;  %v307_v32 = vlaneseq  ;;  %v406_v50 = vld [vmem:[%s2626_s3 + $0x168] sm:$0xff] }
  0xfd   :  { %442 = vmatpush1.msra.mxu1 %v406_v50 }
  0xfe   :  { %v205_v62 = vsub.f32 %v2121_v60, %v204_v61  ;;  %v2140_v35 = vshrl.u32 %v307_v32, 7  ;;  %443 = vmatprep.subr.mxu1 %v1969_v26 }
  0xff   :  { %444 = vmatpush1.msra.mxu1 %v405_v51 }
 0x100   :  { %v207_v0 = vadd.f32 %v206_v63, %v205_v62  ;;  %v2143_v37 = vsub.s32 0, %v2140_v35  ;;  %445 = vmatprep.subr.mxu1 %v1969_v26 }
 0x101   :  { %446 = vmatpush1.msra.mxu1 %v404_v52 }
 0x102   :  { %v208_v1 = vmax.f32 %v207_v0, 0.0  ;;  %447 = vmatprep.subr.mxu1 %v1969_v26 }
 0x103   :  { %448 = vmatpush1.msra.mxu1 %v403_v53 }
 0x104   :  { %v213_v2 = vpack.c.bf16 %v208_v1, %v208_v1  ;;  %449 = vmatprep.subr.mxu1 %v1969_v26 }
 0x105   :  { %450 = vmatpush1.msra.mxu1 %v402_v54 }
 0x106   :  { %1857 = vmatmul.mubr.msk.bf16.vlgmr.msra.gmra.mxu0 %vm226_vm3, %v213_v2  ;;  %451 = vmatprep.subr.mxu1 %v1969_v26  ;;  %v398_v2 = vld [vmem:[%s2626_s3 + $0x128] sm:$0xff] }
 0x107   :  { %367 = vmatpush1.bf16.msra.mxu0 %v1894_v33  ;;  %386 = vmatprep.mubr.bf16.mxu0 %v1973_v42 }
 0x108   :  { %368 = vmatprep.subr.bf16.mxu0 %v1899_v40  ;;  %452 = vmatpush1.msra.mxu1 %v401_v55 }
 0x109   :  { %453 = vmatprep.subr.mxu1 %v1969_v26 }
 0x10a   :  { %454 = vmatpush1.msra.mxu1 %v400_v56  ;;  %v2254_v56 = vsub.s32 1, %v2140_v35 }
 0x10b   :  { %369 = vmatpush1.bf16.msra.mxu0 %v1897_v41  ;;  %455 = vmatprep.subr.mxu1 %v1969_v26 }
 0x10c   :  { %456 = vmatpush1.msra.mxu1 %v399_v58 }
 0x10d   :  { %457 = vmatprep.subr.mxu1 %v1969_v26 }
 0x10e   :  { %458 = vmatpush1.msra.mxu1 %v398_v2 }
 0x10f   :  { %459 = vmatprep.subr.mxu1 %v1969_v26 }
 0x1c6   :  { %v2125_v3 = vpop.f32.mrf.mxu0 }
 0x1c7   :  { %v270_v4 = vsel %vm180_vm2, %v2125_v3, 0.0  ;;  %v278_v5 = vmul.f32 %v2125_v3, %v2125_v3 }
 0x1c8   :  { %v271_v6 = vrot.slane %v270_v4, 4  ;;  %v1858_v7 = vpop.f32.mrf.mxu0 }
 0x1c9   :  { %v279_v8 = vsel %vm180_vm2, %v278_v5, 0.0  ;;  %v395_v5 = vld [vmem:[%s2626_s3 + $0x110] sm:$0xff] }
 0x1ca   :  { %v272_v9 = vadd.f32 %v271_v6, %v270_v4  ;;  %v280_v10 = vrot.slane %v279_v8, 4  ;;  %v267_v11 = vpop.f32.mrf.mxu0  ;;  %v397_v4 = vld [vmem:[%s2626_s3 + $0x120] sm:$0xff]  ;;  %v411_v6 = vld [vmem:[%s2626_s3 + $0x190] sm:$0xf] }
 0x1cb   :  { %460 = vmatpush1.msra.mxu1 %v397_v4 }
 0x1cc   :  { %v273_v12 = vrot.slane %v272_v9, 2  ;;  %v281_v13 = vadd.f32 %v280_v10, %v279_v8  ;;  %v1859_v14 = vpop.f32.mrf.mxu0  ;;  %461 = vmatprep.subr.mxu1 %v1969_v26 }
 0x1ce   :  { %v274_v15 = vadd.f32 %v273_v12, %v272_v9  ;;  %v282_v16 = vrot.slane %v281_v13, 2 }
 0x1d0   :  { %v275_v17 = vrot.slane %v274_v15, 1  ;;  %v283_v18 = vadd.f32 %v282_v16, %v281_v13 }
 0x1d2   :  { %v276_v19 = vadd.f32 %v275_v17, %v274_v15  ;;  %v284_v20 = vrot.slane %v283_v18, 1 }
 0x1d4   :  { %v277_v21 = vmul.f32 0.5, %v276_v19  ;;  %v285_v22 = vadd.f32 %v284_v20, %v283_v18 }
 0x1d6   :  { %v286_v23 = vmul.f32 0.5, %v285_v22  ;;  %v287_v24 = vmul.f32 %v277_v21, %v277_v21 }
 0x1d8   :  { %v288_v25 = vsub.f32 %v286_v23, %v287_v24 }
 0x1da   :  { %v289_v27 = vmax.f32 %v288_v25, 0.0 }
 0x1dc   :  { %v290_v28 = vadd.f32 1e-05, %v289_v27 }
 0x1de   :  { %1902 = vrsqrt.f32 %v290_v28 }
 0x1eb   :  { %v1903_v29 = vpop.eup %1902 }
 0x1ec   :  { %293 = vrot.lane.b32.xlu0 %v1903_v29, %s1971_s30 }
 0x25e   :  { %v294_v30 = vpop.permute.xlu0 %293 }
 0x25f   :  { %v296_v31 = vmul.f32 %v294_v30, %v2115_v57 }
 0x261   :  { %298 = vrot.lane.b32.xlu0 %v296_v31, %s1972_s6  ;;  %v310_v39 = vrot.slane %v296_v31, %v2143_v37 }
 0x2d3   :  { %v299_v36 = vpop.permute.xlu0 %298 }
 0x2d4   :  { %v301_v38 = vmul.f32 %v299_v36, %v277_v21 }
 0x2d6   :  { %303 = vrot.lane.b32.xlu1 %v301_v38, %s1971_s30 }
 0x2da   :  { %312 = vrot.lane.b32.xlu1 %v310_v39, %s1972_s6 }
 0x348   :  { %v304_v45 = vpop.permute.xlu1 %303 }
 0x349   :  { %v306_v47 = vsub.f32 %v2121_v60, %v304_v45 }
 0x34b   :  { %v319_v49 = vrot.slane %v306_v47, %v2143_v37  ;;  %v413_v47 = vld [vmem:[%s2627_s4 + $0x20] sm:$0xf] }
 0x34c   :  { %v313_v59 = vpop.permute.xlu1 %312  ;;  %1725 = vmatprep.subr.msk.mxu0 %vm429_vm4, %v413_v47 }
 0x34d   :  { %321 = vrot.lane.b32.xlu0 %v319_v49, %s1972_s6  ;;  %v315_v61 = vmul.f32 %v313_v59, %v2125_v3  ;;  %v396_v3 = vld [vmem:[%s2626_s3 + $0x118] sm:$0xff] }
 0x34e   :  { %462 = vmatpush1.msra.mxu1 %v396_v3 }
 0x34f   :  { %463 = vmatprep.subr.mxu1 %v1969_v26 }
 0x350   :  { %464 = vmatpush1.msra.mxu1 %v395_v5 }
 0x351   :  { %495 = vmatprep.subr.mxu1 %v1969_v26 }
 0x352   :  { %1723 = vmatpush2.msk.msra.mxu1 %vm429_vm4, %v411_v6 }
 0x3bf   :  { %v322_v62 = vpop.permute.xlu0 %321 }
 0x3c0   :  { %v324_v63 = vadd.f32 %v322_v62, %v315_v61 }
 0x3c2   :  { %v325_v0 = vmax.f32 %v324_v63, 0.0 }
 0x3c4   :  { %v330_v1 = vpack.c.bf16 %v325_v0, %v325_v0 }
 0x3c6   :  { %1722 = vmatmul.mubr.msk.bf16.vlgmr.msra.gmra.mxu0 %vm226_vm3, %v330_v1 }
 0x3c7   :  { %623 = vmatprep.mubr.f32.mxu0 %v1969_v26  ;;  %1726 = vmatpush1.msk.msra.mxu0 %vm429_vm4, %v412_v48 }
 0x486   :  { %v2228_v7 = vpop.f32.mrf.mxu0 }
 0x487   :  { %v414_v8 = vmul.f32 %v2228_v7, %v2228_v7 }
 0x488   :  { %v2232_v9 = vpop.f32.mrf.mxu0 }
 0x489   :  { %v415_v10 = vmul.f32 %v2232_v9, %v2232_v9  ;;  %v418_v11 = vrot.slane %v414_v8, 6 }
 0x48a   :  { %v392_v12 = vpop.f32.mrf.mxu0 }
 0x48b   :  { %v419_v13 = vrot.slane %v415_v10, 6  ;;  %v423_v16 = vsel %vm422_vm5, %v2228_v7, %v418_v11 }
 0x48c   :  { %v393_v14 = vpop.f32.mrf.mxu0 }
 0x48d   :  { %v424_v15 = vsel %vm422_vm5, %v2232_v9, %v419_v13 }
 0x48e   :  { %1724 = vmatprep.mubr.msk.f32.mxu1 %vm425_vm6, %v424_v15 }
 0x48f   :  { %498 = vmatmul.mubr.f32.vlgmr.msra.gmra.mxu1 %v423_v16 }
 0x54f   :  { %v499_v17 = vpop.f32.mrf.mxu1 }
 0x550   :  { %v504_v18 = vsel %vm503_vm7, %v499_v17, 0.0  ;;  %v513_v19 = vrot.slane %v499_v17, 2 }
 0x551   :  { %v505_v20 = vrot.slane %v504_v18, 4  ;;  %v501_v21 = vpop.f32.mrf.mxu1 }
 0x552   :  { %v515_v22 = vsel %vm503_vm7, %v513_v19, 0.0 }
 0x553   :  { %v506_v23 = vadd.f32 %v505_v20, %v504_v18  ;;  %v516_v24 = vrot.slane %v515_v22, 4 }
 0x555   :  { %v507_v25 = vrot.slane %v506_v23, 2  ;;  %v517_v27 = vadd.f32 %v516_v24, %v515_v22 }
 0x557   :  { %v508_v28 = vadd.f32 %v507_v25, %v506_v23  ;;  %v518_v29 = vrot.slane %v517_v27, 2 }
 0x559   :  { %v509_v30 = vrot.slane %v508_v28, 1  ;;  %v519_v31 = vadd.f32 %v518_v29, %v517_v27 }
 0x55b   :  { %v510_v32 = vadd.f32 %v509_v30, %v508_v28  ;;  %v520_v33 = vrot.slane %v519_v31, 1 }
 0x55d   :  { %v511_v34 = vmul.f32 0.015151516, %v510_v32  ;;  %v521_v36 = vadd.f32 %v520_v33, %v519_v31 }
 0x55f   :  { %v522_v38 = vmul.f32 0.015151516, %v521_v36  ;;  %v523_v39 = vmul.f32 %v511_v34, %v511_v34 }
 0x561   :  { %v524_v40 = vsub.f32 %v522_v38, %v523_v39 }
 0x563   :  { %v525_v41 = vmax.f32 %v524_v40, 0.0 }
 0x565   :  { %v526_v43 = vadd.f32 1e-05, %v525_v41 }
 0x567   :  { %1904 = vrsqrt.f32 %v526_v43 }
 0x574   :  { %v1905_v44 = vpop.eup %1904 }
 0x575   :  { %529 = vrot.lane.b32.xlu1 %v1905_v44, %s1974_s1 }
 0x5e7   :  { %v530_v45 = vpop.permute.xlu1 %529 }
 0x5e8   :  { %v532_v46 = vmul.f32 %v530_v45, %v2115_v57 }
 0x5ea   :  { %534 = vrot.lane.b32.xlu0 %v532_v46, %s1974_s1 }
 0x65c   :  { %v535_v49 = vpop.permute.xlu0 %534 }
 0x65d   :  { %v537_v50 = vmul.f32 %v535_v49, %v511_v34 }
 0x65f   :  { %539 = vrot.lane.b32.xlu1 %v537_v50, %s1974_s1 }
 0x6d1   :  { %v540_v51 = vpop.permute.xlu1 %539 }
 0x6d2   :  { %v542_v52 = vsub.f32 %v2121_v60, %v540_v51 }
 0x6d4   :  { %v544_v53 = vrot.slane %v542_v52, 7 }
 0x6d6   :  { %v547_v54 = vsel %vm546_vm8, %v532_v46, %v544_v53 }
 0x6d7   :  { %549 = vrot.lane.b32.xlu0 %v547_v54, %s1974_s1 }
 0x749   :  { %v550_v55 = vpop.permute.xlu0 %549 }
 0x74a   :  { %1727 = vmatmul.mubr.msk.f32.vlgmr.msra.gmra.mxu0 %vm425_vm6, %v550_v55 }
 0x80a   :  { %v625_v58 = vpop.f32.mrf.mxu0 }
 0x80b   :  { %v633_v59 = vrot.slane %v625_v58, %v2143_v37  ;;  %v643_v63 = vrot.slane %v625_v58, %v2254_v56 }
 0x80c   :  { %v627_v61 = vpop.f32.mrf.mxu0 }
 0x80d   :  { %v638_v62 = vmul.f32 %v633_v59, %v2228_v7  ;;  %v637_v0 = vrot.slane %v627_v61, %v2143_v37  ;;  %v647_v4 = vrot.slane %v627_v61, %v2254_v56 }
 0x80f   :  { %v2260_v1 = vadd.f32 %v643_v63, %v638_v62  ;;  %v639_v2 = vmul.f32 %v637_v0, %v2232_v9 }
 0x811   :  { %v650_v3 = vmax.f32 %v2260_v1, 0.0  ;;  %v649_v35 = vadd.f32 %v647_v4, %v639_v2 }
 0x813   :  { %v651_v5 = vmax.f32 %v649_v35, 0.0 }
 0x814   :  { %1965 = dma.done.wait [#allocation3], 3264 }
 0x815   :  { %1966 = vsyncadd [#allocation3], 4294964032  ;;  %881 = vmatprep.subr.bf16.mxu1 %v1973_v42  ;;  %v691_v6 = vpack.c.bf16 %v651_v5, %v651_v5  ;;  %v1906_v7 = vld [vmem:[#allocation2 + $0xac] ss:$12 sps:$4 sm:$0xff]   ;;  %v1908_v8 = vld [vmem:[#allocation2 + $0xa8] ss:$12 sps:$4 sm:$0xff]   ;;  %v690_v41 = vpack.c.bf16 %v650_v3, %v650_v3 }
 0x816   :  { %840 = vmatprep.subr.bf16.mxu0 %v1906_v7  ;;  %v1909_v10 = vld [vmem:[#allocation2 + $0xb0] ss:$12 sps:$4 sm:$0xff]   ;;  %v1910_v9 = vld [vmem:[#allocation2 + $0x94] ss:$12 sps:$4 sm:$0xff]   ;;  %v1913_v12 = vld [vmem:[#allocation2 + $0x98] ss:$12 sps:$4 sm:$0xff]  }
 0x817   :  { %1756 = vmatprep.mubr.msk.bf16.mxu0 %vm425_vm6, %v691_v6  ;;  %1757 = vmatprep.mubr.msk.bf16.mxu1 %vm425_vm6, %v691_v6  ;;  %v1912_v11 = vld [vmem:[#allocation2 + $0x90] ss:$12 sps:$4 sm:$0xff]   ;;  %v1916_v14 = vld [vmem:[#allocation2 + $0x78] ss:$12 sps:$4 sm:$0xff]   ;;  %v1917_v15 = vld [vmem:[#allocation2 + $0x80] ss:$12 sps:$4 sm:$0xff]  }
 0x818   :  { %841 = vmatpush1.bf16.msra.mxu0 %v1908_v8  ;;  %882 = vmatpush1.bf16.msra.mxu1 %v1909_v10  ;;  %v1914_v13 = vld [vmem:[#allocation2 + $0x7c] ss:$12 sps:$4 sm:$0xff]   ;;  %v1918_v16 = vld [vmem:[#allocation2 + $0x64] ss:$12 sps:$4 sm:$0xff]   ;;  %v1920_v17 = vld [vmem:[#allocation2 + $0x60] ss:$12 sps:$4 sm:$0xff]  }
 0x819   :  { %842 = vmatprep.subr.bf16.mxu0 %v1910_v9  ;;  %883 = vmatprep.subr.bf16.mxu1 %v1973_v42  ;;  %v1921_v18 = vld [vmem:[#allocation2 + $0x68] ss:$12 sps:$4 sm:$0xff]   ;;  %v1922_v19 = vld [vmem:[#allocation2 + $0x4c] ss:$12 sps:$4 sm:$0xff]   ;;  %v1925_v21 = vld [vmem:[#allocation2 + $0x50] ss:$12 sps:$4 sm:$0xff]  }
 0x81a   :  { %v1924_v20 = vld [vmem:[#allocation2 + $0x48] ss:$12 sps:$4 sm:$0xff]   ;;  %v1928_v23 = vld [vmem:[#allocation2 + $0x30] ss:$12 sps:$4 sm:$0xff]   ;;  %v1929_v24 = vld [vmem:[#allocation2 + $0x38] ss:$12 sps:$4 sm:$0xff]  }
 0x81b   :  { %v1926_v22 = vld [vmem:[#allocation2 + $0x34] ss:$12 sps:$4 sm:$0xff]   ;;  %v1930_v25 = vld [vmem:[#allocation2 + $0x1c] ss:$12 sps:$4 sm:$0xff]   ;;  %v1932_v27 = vld [vmem:[#allocation2 + $0x18] ss:$12 sps:$4 sm:$0xff]  }
 0x81c   :  { %843 = vmatpush1.bf16.msra.mxu0 %v1912_v11  ;;  %884 = vmatpush1.bf16.msra.mxu1 %v1913_v12  ;;  %v1933_v28 = vld [vmem:[#allocation2 + $0x20] ss:$12 sps:$4 sm:$0xff]   ;;  %v1934_v29 = vld [vmem:[#allocation2 + $0x4] ss:$12 sps:$4 sm:$0xff]   ;;  %v1937_v32 = vld [vmem:[#allocation2 + $0x8] ss:$12 sps:$4 sm:$0xff]  }
 0x81d   :  { %844 = vmatprep.subr.bf16.mxu0 %v1914_v13  ;;  %885 = vmatprep.subr.bf16.mxu1 %v1973_v42  ;;  %v688_v30 = vld [vmem:[#allocation2 + $0xc0] sm:$0x33]  ;;  %v1940_v36 = vld [vmem:[#allocation2 + $0xc8] ss:$0 sps:$4 sm:$0x33]   ;;  %v2282_v40 = vld [vmem:[%s2626_s3 + $0xf8] sm:$0xff] }
 0x81e   :  { %v1936_v31 = vld [vmem:[#allocation2] ss:$12 sps:$4 sm:$0xff]   ;;  %v1753_v33 = vcombine.high %v688_v30, %v688_v30  ;;  %v1752_v34 = vcombine.low %v688_v30, %v688_v30  ;;  %v838_v39 = vsel %vm422_vm5, %v1940_v36, 0  ;;  %v2291_v43 = vld [vmem:[%s2626_s3 + $0x78] sm:$0xff]  ;;  %v2301_v44 = vld [vmem:[%s2626_s3 + $0x70] sm:$0xff]  ;;  %vm1116_vm9 = vcmask 58368  }
 0x81f   :  { %v2307_v45 = vld [vmem:[%s2626_s3 + $0xe8] sm:$0xff]  ;;  %v2320_v47 = vld [vmem:[%s2626_s3 + $0xe0] sm:$0xff]  ;;  %v2332_v49 = vld [vmem:[%s2626_s3 + $0xd8] sm:$0xff]  ;;  %s1976_s10 = smov 56   ;;  %s1977_s17 = smov 120   ;;  %vm1163_vm10 = vcmask 64512  }
 0x820   :  { %845 = vmatpush1.bf16.msra.mxu0 %v1916_v14  ;;  %886 = vmatpush1.bf16.msra.mxu1 %v1917_v15  ;;  %v832_v38 = vsel %vm422_vm5, %v1752_v34, 0  ;;  %v2313_v46 = vld [vmem:[%s2626_s3 + $0x68] sm:$0xff]  ;;  %v2326_v48 = vld [vmem:[%s2626_s3 + $0x60] sm:$0xff]  ;;  %v2338_v50 = vld [vmem:[%s2626_s3 + $0x58] sm:$0xff]  ;;  %s1978_s18 = smov 80   ;;  %s1979_s1 = smov 48  }
 0x821   :  { %846 = vmatprep.subr.bf16.mxu0 %v1918_v16  ;;  %887 = vmatprep.subr.bf16.mxu1 %v1973_v42  ;;  %v2344_v51 = vld [vmem:[%s2626_s3 + $0xd0] sm:$0xff]  ;;  %v2356_v53 = vld [vmem:[%s2626_s3 + $0xc8] sm:$0xff]  ;;  %v2368_v55 = vld [vmem:[%s2626_s3 + $0xc0] sm:$0xff]  ;;  %s1980_s23 = smov [#allocation4]  }
 0x822   :  { %v2350_v52 = vld [vmem:[%s2626_s3 + $0x50] sm:$0xff]  ;;  %v2362_v54 = vld [vmem:[%s2626_s3 + $0x48] sm:$0xff]  ;;  %v2374_v58 = vld [vmem:[%s2626_s3 + $0x40] sm:$0xff]  ;;  %s1684_s2 = sshll.u32 %s1980_s23, 4  ;;  %s1685_s2 = int_to_ptr.vmem [resolvable:$true] %s1684_s2 }
 0x823   :  { %v2380_v59 = vld [vmem:[%s2626_s3 + $0xb8] sm:$0xff]  ;;  %v2392_v62 = vld [vmem:[%s2626_s3 + $0xb0] sm:$0xff]  ;;  %v2404_v0 = vld [vmem:[%s2626_s3 + $0xa8] sm:$0xff]  ;;  %s1945_s24 = scalar_lea.vmem %s1685_s2, 32  ;;  %p1950_p1 = scmp.lt.s32.totalorder %s1685_s2, %s1685_s2 }
 0x824   :  { %847 = vmatpush1.bf16.msra.mxu0 %v1920_v17  ;;  %888 = vmatpush1.bf16.msra.mxu1 %v1921_v18  ;;  %v2386_v61 = vld [vmem:[%s2626_s3 + $0x38] sm:$0xff]  ;;  %v2398_v63 = vld [vmem:[%s2626_s3 + $0x30] sm:$0xff]  ;;  %v2410_v1 = vld [vmem:[%s2626_s3 + $0x28] sm:$0xff]  ;;  %p1946_p0 = scmp.ne.s32.totalorder %s1685_s2, %s1945_s24  ;;  %p1951_p2 = scmp.lt.s32.totalorder %s1945_s24, %s1945_s24 }
 0x825   :  { %848 = vmatprep.subr.bf16.mxu0 %v1922_v19  ;;  %889 = vmatprep.subr.bf16.mxu1 %v1973_v42  ;;  %v2416_v2 = vld [vmem:[%s2626_s3 + $0xa0] sm:$0xff]  ;;  %v2430_v3 = vld [vmem:[%s2626_s3 + $0x98] sm:$0xff]  ;;  %v2442_v5 = vld [vmem:[%s2626_s3 + $0x90] sm:$0xff] }
 0x826   :  { %v2422_v4 = vld [vmem:[%s2626_s3 + $0x20] sm:$0xff]  ;;  %v2436_v35 = vld [vmem:[%s2626_s3 + $0x18] sm:$0xff]  ;;  %v2448_v6 = vld [vmem:[%s2626_s3 + $0x10] sm:$0xff]  ;;  %p1952_p3 = por %p1951_p2, %p1950_p1 }
 0x827   :  { %v2454_v7 = vld [vmem:[%s2626_s3 + $0x88] sm:$0xff]  ;;  %v2466_v10 = vld [vmem:[%s2626_s3 + $0x80] sm:$0xff] }
 0x828   :  { %849 = vmatpush1.bf16.msra.mxu0 %v1924_v20  ;;  %890 = vmatpush1.bf16.msra.mxu1 %v1925_v21  ;;  %v2460_v8 = vld [vmem:[%s2626_s3 + $0x8] sm:$0xff]  ;;  %v2472_v9 = vld [vmem:[%s2626_s3] sm:$0xff]  ;;  %p1953_p4 = pnand %p1952_p3, %p1946_p0 }
 0x829   :  { %850 = vmatprep.subr.bf16.mxu0 %v1926_v22  ;;  %891 = vmatprep.subr.bf16.mxu1 %v1973_v42 }
 0x82c   :  { %851 = vmatpush1.bf16.msra.mxu0 %v1928_v23  ;;  %892 = vmatpush1.bf16.msra.mxu1 %v1929_v24 }
 0x82d   :  { %852 = vmatprep.subr.bf16.mxu0 %v1930_v25  ;;  %893 = vmatprep.subr.bf16.mxu1 %v1973_v42  ;;  %v2493_v25 = vld [vmem:[%s2626_s3 + $0x108] sm:$0xff] }
 0x830   :  { %853 = vmatpush1.bf16.msra.mxu0 %v1932_v27  ;;  %894 = vmatpush1.bf16.msra.mxu1 %v1933_v28 }
 0x831   :  { %854 = vmatprep.subr.bf16.mxu0 %v1934_v29  ;;  %895 = vmatprep.subr.bf16.mxu1 %v1973_v42  ;;  %v2500_v29 = vld [vmem:[%s2626_s3 + $0x100] sm:$0xff] }
 0x834   :  { %855 = vmatpush1.bf16.msra.mxu0 %v1936_v31  ;;  %896 = vmatpush1.bf16.msra.mxu1 %v1937_v32 }
 0x835   :  { %1755 = vmatprep.subr.msk.bf16.mxu0 %vm422_vm5, %v1753_v33  ;;  %911 = vmatprep.subr.bf16.mxu1 %v1973_v42  ;;  %v2296_v42 = vld [vmem:[%s2626_s3 + $0xf0] sm:$0xff]  ;;  %s1975_s3 = smov 72  }
 0x838   :  { %871 = vmatpush2.bf16.msra.mxu0 %v832_v38  ;;  %912 = vmatpush2.bf16.msra.mxu1 %v838_v39 }
 0x839   :  { %1768 = vmatprep.subr.mxu0 %v2282_v40 }
 0x83b   :  { %873 = vmatmul.mubr.bf16.vlgmr.msra.gmra.mxu0 %v690_v41  ;;  %914 = vmatmul.mubr.bf16.vlgmr.msra.gmra.mxu1 %v690_v41 }
 0x83c   :  { %1769 = vmatpush3.msra.mxu0 %v2291_v43  ;;  %1230 = vmatprep.mubr.f32.mxu1 %v1969_v26 }
 0x83d   :  { %1770 = vmatprep.subr.mxu0 %v2296_v42 }
 0x83e   :  { %1771 = vmatpush3.msra.mxu0 %v2301_v44 }
 0x83f   :  { %1772 = vmatprep.subr.mxu0 %v2307_v45 }
 0x840   :  { %1773 = vmatpush3.msra.mxu0 %v2313_v46 }
 0x841   :  { %1774 = vmatprep.subr.mxu0 %v2320_v47 }
 0x842   :  { %1775 = vmatpush3.msra.mxu0 %v2326_v48 }
 0x843   :  { %1776 = vmatprep.subr.mxu0 %v2332_v49 }
 0x844   :  { %1777 = vmatpush3.msra.mxu0 %v2338_v50 }
 0x845   :  { %1778 = vmatprep.subr.mxu0 %v2344_v51 }
 0x846   :  { %1779 = vmatpush3.msra.mxu0 %v2350_v52 }
 0x847   :  { %1780 = vmatprep.subr.mxu0 %v2356_v53 }
 0x848   :  { %1781 = vmatpush3.msra.mxu0 %v2362_v54 }
 0x849   :  { %1782 = vmatprep.subr.mxu0 %v2368_v55 }
 0x84a   :  { %1783 = vmatpush3.msra.mxu0 %v2374_v58 }
 0x84b   :  { %1784 = vmatprep.subr.mxu0 %v2380_v59 }
 0x84c   :  { %1785 = vmatpush3.msra.mxu0 %v2386_v61 }
 0x84d   :  { %1786 = vmatprep.subr.mxu0 %v2392_v62 }
 0x84e   :  { %1787 = vmatpush3.msra.mxu0 %v2398_v63 }
 0x84f   :  { %1788 = vmatprep.subr.mxu0 %v2404_v0 }
 0x850   :  { %1789 = vmatpush3.msra.mxu0 %v2410_v1 }
 0x851   :  { %1790 = vmatprep.subr.mxu0 %v2416_v2 }
 0x852   :  { %1791 = vmatpush3.msra.mxu0 %v2422_v4 }
 0x853   :  { %1792 = vmatprep.subr.mxu0 %v2430_v3 }
 0x854   :  { %1793 = vmatpush3.msra.mxu0 %v2436_v35 }
 0x855   :  { %1794 = vmatprep.subr.mxu0 %v2442_v5 }
 0x856   :  { %1795 = vmatpush3.msra.mxu0 %v2448_v6 }
 0x857   :  { %1796 = vmatprep.subr.mxu0 %v2454_v7 }
 0x858   :  { %1797 = vmatpush3.msra.mxu0 %v2460_v8 }
 0x859   :  { %1798 = vmatprep.subr.mxu0 %v2466_v10 }
 0x85a   :  { %1799 = vmatpush3.msra.mxu0 %v2472_v9 }
 0x85b   :  { %1860 = vmatprep.subr.mxu0 %v1969_v26 }
 0x8fb   :  { %v2476_v11 = vpop.f32.mrf.mxu0  ;;  %v2480_v13 = vpop.f32.mrf.mxu1 }
 0x8fc   :  { %v958_v12 = vmul.f32 %v2476_v11, %v2476_v11  ;;  %v960_v18 = vmul.f32 %v2480_v13, %v2480_v13 }
 0x8fd   :  { %v2482_v14 = vpop.f32.mrf.mxu0  ;;  %v917_v16 = vpop.f32.mrf.mxu1 }
 0x8fe   :  { %v959_v15 = vmul.f32 %v2482_v14, %v2482_v14  ;;  %v964_v17 = vrot.slane %v958_v12, 6  ;;  %v966_v27 = vrot.slane %v960_v18, 6 }
 0x8ff   :  { %v878_v19 = vpop.f32.mrf.mxu0  ;;  %v918_v20 = vpop.f32.mrf.mxu1 }
 0x900   :  { %v965_v21 = vrot.slane %v959_v15, 6  ;;  %v970_v28 = vsel %vm422_vm5, %v2476_v11, %v964_v17  ;;  %v972_v30 = vsel %vm422_vm5, %v2480_v13, %v966_v27 }
 0x901   :  { %v879_v22 = vpop.f32.mrf.mxu0  ;;  %v919_v23 = vpop.f32.mrf.mxu1 }
 0x902   :  { %v971_v24 = vsel %vm422_vm5, %v2482_v14, %v965_v21 }
 0x903   :  { %1040 = vmatprep.mubr.f32.mxu0 %v971_v24 }
 0x904   :  { %1041 = vmatmul.mubr.f32.vlgmr.msra.gmra.mxu0 %v970_v28 }
 0x905   :  { %1861 = vmatpush3.msra.mxu0 %v2493_v25  ;;  %1864 = vmatprep.mubr.msk.f32.mxu0 %vm1970_vm0, %v1969_v26 }
 0x906   :  { %1862 = vmatprep.subr.mxu0 %v1969_v26 }
 0x907   :  { %1863 = vmatpush3.msra.mxu0 %v2500_v29 }
 0x908   :  { %1865 = vmatmul.mubr.msk.f32.vlgmr.msra.gmra.mxu0 %vm136_vm1, %v972_v30  ;;  %1867 = vmatprep.subr.mxu0 %v1969_v26 }
 0x909   :  { %1869 = vmatprep.mubr.msk.f32.mxu0 %vm1970_vm0, %v1969_v26 }
 0x9c4   :  { %v1800_v31 = vpop.f32.mrf.mxu0 }
 0x9c6   :  { %v1801_v32 = vpop.f32.mrf.mxu0 }
 0x9c7   :  { %v1802_v33 = vadd.f32 %v1801_v32, %v1800_v31 }
 0x9c8   :  { %v1112_v34 = vpop.f32.mrf.mxu0 }
 0x9c9   :  { %v1113_v36 = vadd.f32 %v1802_v33, %v1112_v34 }
 0x9ca   :  { %v1866_v38 = vpop.f32.mrf.mxu0 }
 0x9cb   :  { %v1117_v39 = vsel %vm1116_vm9, %v1113_v36, 0.0  ;;  %v1126_v41 = vrot.slane %v1113_v36, 2 }
 0x9cc   :  { %v1118_v12 = vrot.slane %v1117_v39, 4 }
 0x9cd   :  { %v1128_v15 = vsel %vm1116_vm9, %v1126_v41, 0.0 }
 0x9ce   :  { %v1119_v16 = vadd.f32 %v1118_v12, %v1117_v39  ;;  %v1129_v17 = vrot.slane %v1128_v15, 4  ;;  %v956_v12 = vld [vmem:[%s2627_s4 + $0x38] sm:$0xff] }
 0x9cf   :  { %1196 = vmatprep.subr.mxu1 %v956_v12 }
 0x9d0   :  { %v1120_v18 = vrot.slane %v1119_v16, 2  ;;  %v1130_v19 = vadd.f32 %v1129_v17, %v1128_v15  ;;  %v955_v15 = vld [vmem:[%s2627_s4 + $0x30] sm:$0xff] }
 0x9d1   :  { %1197 = vmatpush1.msra.mxu1 %v955_v15 }
 0x9d2   :  { %v1121_v20 = vadd.f32 %v1120_v18, %v1119_v16  ;;  %v1131_v21 = vrot.slane %v1130_v19, 2  ;;  %v957_v16 = vld [vmem:[%s2627_s4 + $0x40] sm:$0xff] }
 0x9d3   :  { %1868 = vmatpush3.msra.mxu0 %v957_v16 }
 0x9d4   :  { %v1122_v22 = vrot.slane %v1121_v20, 1  ;;  %v1132_v23 = vadd.f32 %v1131_v21, %v1130_v19  ;;  %1872 = vmatprep.subr.mxu0 %v1969_v26 }
 0x9d6   :  { %v1123_v24 = vadd.f32 %v1122_v22, %v1121_v20  ;;  %v1133_v27 = vrot.slane %v1132_v23, 1 }
 0x9d8   :  { %v1124_v28 = vmul.f32 0.014705882, %v1123_v24  ;;  %v1134_v30 = vadd.f32 %v1133_v27, %v1132_v23 }
 0x9da   :  { %v1135_v31 = vmul.f32 0.014705882, %v1134_v30  ;;  %v1136_v32 = vmul.f32 %v1124_v28, %v1124_v28 }
 0x9dc   :  { %v1137_v33 = vsub.f32 %v1135_v31, %v1136_v32 }
 0x9de   :  { %v1138_v34 = vmax.f32 %v1137_v33, 0.0 }
 0x9e0   :  { %v1139_v36 = vadd.f32 1e-05, %v1138_v34 }
 0x9e2   :  { %1941 = vrsqrt.f32 %v1139_v36 }
 0x9ef   :  { %v1942_v38 = vpop.eup %1941 }
 0x9f0   :  { %1142 = vrot.lane.b32.xlu0 %v1942_v38, %s1975_s3 }
 0xa62   :  { %v1143_v39 = vpop.permute.xlu0 %1142 }
 0xa63   :  { %v1145_v41 = vmul.f32 %v1143_v39, %v2115_v57 }
 0xa65   :  { %1147 = vrot.lane.b32.xlu0 %v1145_v41, %s1976_s10 }
 0xa69   :  { %1438 = vrot.lane.b32.xlu0 %v2282_v40, %s1977_s17 }
 0xa6d   :  { %1436 = vrot.lane.b32.xlu0 %v2296_v42, %s1977_s17 }
 0xa71   :  { %1434 = vrot.lane.b32.xlu0 %v2307_v45, %s1977_s17 }
 0xa75   :  { %1432 = vrot.lane.b32.xlu0 %v2320_v47, %s1977_s17 }
 0xa79   :  { %1430 = vrot.lane.b32.xlu0 %v2332_v49, %s1977_s17 }
 0xa7d   :  { %1428 = vrot.lane.b32.xlu0 %v2344_v51, %s1977_s17 }
 0xa81   :  { %1426 = vrot.lane.b32.xlu0 %v2356_v53, %s1977_s17 }
 0xa85   :  { %1424 = vrot.lane.b32.xlu0 %v2368_v55, %s1977_s17 }
 0xa89   :  { %1422 = vrot.lane.b32.xlu0 %v2380_v59, %s1977_s17 }
 0xa8d   :  { %1420 = vrot.lane.b32.xlu0 %v2392_v62, %s1977_s17 }
 0xa91   :  { %1418 = vrot.lane.b32.xlu0 %v2404_v0, %s1977_s17 }
 0xa95   :  { %1416 = vrot.lane.b32.xlu0 %v2416_v2, %s1977_s17 }
 0xa99   :  { %1414 = vrot.lane.b32.xlu0 %v2430_v3, %s1977_s17 }
 0xa9d   :  { %1412 = vrot.lane.b32.xlu0 %v2442_v5, %s1977_s17 }
 0xaa1   :  { %1410 = vrot.lane.b32.xlu0 %v2454_v7, %s1977_s17 }
 0xaa5   :  { %1408 = vrot.lane.b32.xlu0 %v2466_v10, %s1977_s17 }
 0xaa9   :  { %1442 = vrot.lane.b32.xlu0 %v2493_v25, %s1977_s17 }
 0xad7   :  { %v1148_v57 = vpop.permute.xlu0 %1147 }
 0xad8   :  { %v1150_v17 = vmul.f32 %v1148_v57, %v1124_v28 }
 0xada   :  { %1152 = vrot.lane.b32.xlu1 %v1150_v17, %s1975_s3 }
 0xb4c   :  { %v1153_v18 = vpop.permute.xlu1 %1152 }
 0xb4d   :  { %v1155_v19 = vsub.f32 %v2121_v60, %v1153_v18  ;;  %v1439_v60 = vpop.permute.xlu0 %1438 }
 0xb4e   :  { %1808 = vmatprep.subr.mxu1 %v1439_v60 }
 0xb4f   :  { %v1157_v20 = vrot.slane %v1155_v19, 7 }
 0xb51   :  { %v1159_v21 = vsel %vm546_vm8, %v1145_v41, %v1157_v20  ;;  %v1437_v40 = vpop.permute.xlu0 %1436 }
 0xb52   :  { %1161 = vrot.lane.b32.xlu1 %v1159_v21, %s1976_s10 }
 0xb56   :  { %1406 = vrot.lane.b32.xlu1 %v2291_v43, %s1977_s17  ;;  %v1435_v43 = vpop.permute.xlu0 %1434 }
 0xb5a   :  { %1404 = vrot.lane.b32.xlu1 %v2301_v44, %s1977_s17  ;;  %v1433_v44 = vpop.permute.xlu0 %1432 }
 0xb5e   :  { %1402 = vrot.lane.b32.xlu1 %v2313_v46, %s1977_s17  ;;  %v1431_v46 = vpop.permute.xlu0 %1430 }
 0xb62   :  { %1400 = vrot.lane.b32.xlu1 %v2326_v48, %s1977_s17  ;;  %v1429_v48 = vpop.permute.xlu0 %1428 }
 0xb66   :  { %1398 = vrot.lane.b32.xlu1 %v2338_v50, %s1977_s17  ;;  %v1427_v50 = vpop.permute.xlu0 %1426 }
 0xb6a   :  { %1396 = vrot.lane.b32.xlu1 %v2350_v52, %s1977_s17  ;;  %v1425_v52 = vpop.permute.xlu0 %1424 }
 0xb6e   :  { %1394 = vrot.lane.b32.xlu1 %v2362_v54, %s1977_s17  ;;  %v1423_v54 = vpop.permute.xlu0 %1422 }
 0xb72   :  { %1392 = vrot.lane.b32.xlu1 %v2374_v58, %s1977_s17  ;;  %v1421_v58 = vpop.permute.xlu0 %1420 }
 0xb76   :  { %1390 = vrot.lane.b32.xlu1 %v2386_v61, %s1977_s17  ;;  %v1419_v62 = vpop.permute.xlu0 %1418 }
 0xb7a   :  { %1388 = vrot.lane.b32.xlu1 %v2398_v63, %s1977_s17  ;;  %v1417_v0 = vpop.permute.xlu0 %1416 }
 0xb7e   :  { %1386 = vrot.lane.b32.xlu1 %v2410_v1, %s1977_s17 }
 0xb82   :  { %1384 = vrot.lane.b32.xlu1 %v2422_v4, %s1977_s17  ;;  %v1415_v4 = vpop.permute.xlu0 %1414 }
 0xb86   :  { %1382 = vrot.lane.b32.xlu1 %v2436_v35, %s1977_s17  ;;  %v1413_v35 = vpop.permute.xlu0 %1412 }
 0xb8a   :  { %1380 = vrot.lane.b32.xlu1 %v2448_v6, %s1977_s17  ;;  %v1411_v7 = vpop.permute.xlu0 %1410 }
 0xb8e   :  { %1378 = vrot.lane.b32.xlu1 %v2460_v8, %s1977_s17  ;;  %v1409_v10 = vpop.permute.xlu0 %1408 }
 0xb92   :  { %1376 = vrot.lane.b32.xlu1 %v2472_v9, %s1977_s17  ;;  %v1443_v25 = vpop.permute.xlu0 %1442 }
 0xb96   :  { %1440 = vrot.lane.b32.xlu1 %v2500_v29, %s1977_s17 }
 0xbc4   :  { %v1162_v42 = vpop.permute.xlu1 %1161 }
 0xbc5   :  { %1759 = vmatmul.mubr.msk.f32.vlgmr.msra.gmra.mxu1 %vm1163_vm10, %v1162_v42  ;;  %1870 = vmatmul.mubr.msk.f32.vlgmr.msra.gmra.mxu0 %vm1163_vm10, %v1162_v42 }
 0xbc6   :  { %1876 = vmatprep.mubr.msk.f32.mxu0 %vm1970_vm0, %v1969_v26  ;;  %1873 = vmatpush3.msra.mxu0 %v1443_v25 }
 0xbc7   :  { %1874 = vmatprep.subr.mxu0 %v1969_v26 }
 0xbc8   :  { %v1407_v45 = vpop.permute.xlu1 %1406 }
 0xbc9   :  { %1809 = vmatpush3.msra.mxu1 %v1407_v45 }
 0xbca   :  { %1810 = vmatprep.subr.mxu1 %v1437_v40 }
 0xbcc   :  { %v1405_v47 = vpop.permute.xlu1 %1404 }
 0xbcd   :  { %1811 = vmatpush3.msra.mxu1 %v1405_v47 }
 0xbce   :  { %1812 = vmatprep.subr.mxu1 %v1435_v43 }
 0xbd0   :  { %v1403_v49 = vpop.permute.xlu1 %1402 }
 0xbd1   :  { %1813 = vmatpush3.msra.mxu1 %v1403_v49 }
 0xbd2   :  { %1814 = vmatprep.subr.mxu1 %v1433_v44 }
 0xbd4   :  { %v1401_v51 = vpop.permute.xlu1 %1400 }
 0xbd5   :  { %1815 = vmatpush3.msra.mxu1 %v1401_v51 }
 0xbd6   :  { %1816 = vmatprep.subr.mxu1 %v1431_v46 }
 0xbd8   :  { %v1399_v53 = vpop.permute.xlu1 %1398 }
 0xbd9   :  { %1817 = vmatpush3.msra.mxu1 %v1399_v53 }
 0xbda   :  { %1818 = vmatprep.subr.mxu1 %v1429_v48 }
 0xbdc   :  { %v1397_v55 = vpop.permute.xlu1 %1396 }
 0xbdd   :  { %1819 = vmatpush3.msra.mxu1 %v1397_v55 }
 0xbde   :  { %1820 = vmatprep.subr.mxu1 %v1427_v50 }
 0xbe0   :  { %v1395_v59 = vpop.permute.xlu1 %1394 }
 0xbe1   :  { %1821 = vmatpush3.msra.mxu1 %v1395_v59 }
 0xbe2   :  { %1822 = vmatprep.subr.mxu1 %v1425_v52 }
 0xbe4   :  { %v1393_v61 = vpop.permute.xlu1 %1392 }
 0xbe5   :  { %1823 = vmatpush3.msra.mxu1 %v1393_v61 }
 0xbe6   :  { %1824 = vmatprep.subr.mxu1 %v1423_v54 }
 0xbe8   :  { %v1391_v63 = vpop.permute.xlu1 %1390 }
 0xbe9   :  { %1825 = vmatpush3.msra.mxu1 %v1391_v63 }
 0xbea   :  { %1826 = vmatprep.subr.mxu1 %v1421_v58 }
 0xbec   :  { %v1389_v1 = vpop.permute.xlu1 %1388 }
 0xbed   :  { %1827 = vmatpush3.msra.mxu1 %v1389_v1 }
 0xbee   :  { %1828 = vmatprep.subr.mxu1 %v1419_v62  ;;  %v1340_v62 = vld [vmem:[%s2627_s4] ss:$0 sm:$0xff] }
 0xbf0   :  { %v1387_v2 = vpop.permute.xlu1 %1386 }
 0xbf1   :  { %1829 = vmatpush3.msra.mxu1 %v1387_v2 }
 0xbf2   :  { %1830 = vmatprep.subr.mxu1 %v1417_v0 }
 0xbf4   :  { %v1385_v3 = vpop.permute.xlu1 %1384 }
 0xbf5   :  { %1831 = vmatpush3.msra.mxu1 %v1385_v3  ;;  %v1341_v3 = vld [vmem:[%s2627_s4 + $0x1] ss:$0 sm:$0xff] }
 0xbf6   :  { %1832 = vmatprep.subr.mxu1 %v1415_v4 }
 0xbf8   :  { %v1383_v5 = vpop.permute.xlu1 %1382 }
 0xbf9   :  { %1833 = vmatpush3.msra.mxu1 %v1383_v5 }
 0xbfa   :  { %1834 = vmatprep.subr.mxu1 %v1413_v35 }
 0xbfc   :  { %v1381_v6 = vpop.permute.xlu1 %1380 }
 0xbfd   :  { %1835 = vmatpush3.msra.mxu1 %v1381_v6 }
 0xbfe   :  { %1836 = vmatprep.subr.mxu1 %v1411_v7 }
 0xc00   :  { %v1379_v8 = vpop.permute.xlu1 %1378 }
 0xc01   :  { %1837 = vmatpush3.msra.mxu1 %v1379_v8 }
 0xc02   :  { %1838 = vmatprep.subr.mxu1 %v1409_v10 }
 0xc04   :  { %v1377_v9 = vpop.permute.xlu1 %1376 }
 0xc05   :  { %1839 = vmatpush3.msra.mxu1 %v1377_v9 }
 0xc08   :  { %v1441_v29 = vpop.permute.xlu1 %1440 }
 0xc09   :  { %1875 = vmatpush3.msra.mxu0 %v1441_v29 }
 0xc85   :  { %v1232_v22 = vpop.f32.mrf.mxu1  ;;  %v1303_v23 = vpop.f32.mrf.mxu0 }
 0xc86   :  { %v1310_v24 = vrot.slane %v1232_v22, %v2143_v37  ;;  %v1318_v27 = vrot.slane %v1303_v23, %v2143_v37  ;;  %v1333_v33 = vrot.slane %v1303_v23, %v2254_v56  ;;  %v1325_v36 = vrot.slane %v1232_v22, %v2254_v56 }
 0xc87   :  { %v1234_v28 = vpop.f32.mrf.mxu1  ;;  %v1871_v30 = vpop.f32.mrf.mxu0 }
 0xc88   :  { %v1319_v31 = vmul.f32 %v1310_v24, %v2476_v11  ;;  %v1321_v32 = vmul.f32 %v1318_v27, %v2480_v13  ;;  %v1314_v34 = vrot.slane %v1234_v28, %v2143_v37  ;;  %v1329_v39 = vrot.slane %v1234_v28, %v2254_v56 }
 0xc8a   :  { %v1336_v26 = vadd.f32 %v1333_v33, %v1321_v32  ;;  %v1320_v38 = vmul.f32 %v1314_v34, %v2482_v14  ;;  %v1334_v41 = vadd.f32 %v1325_v36, %v1319_v31 }
 0xc8c   :  { %v1339_v12 = vmax.f32 %v1336_v26, 0.0  ;;  %v1335_v15 = vadd.f32 %v1329_v39, %v1320_v38  ;;  %v1337_v11 = vmax.f32 %v1334_v41, 0.0 }
 0xc8e   :  { %1877 = vmatmul.mubr.msk.f32.vlgmr.msra.gmra.mxu0 %vm136_vm1, %v1339_v12  ;;  %v1338_v16 = vmax.f32 %v1335_v15, 0.0 }
 0xc90   :  { %1545 = vmatprep.mubr.f32.mxu1 %v1338_v16 }
 0xc91   :  { %1546 = vmatmul.mubr.f32.vlgmr.msra.gmra.mxu1 %v1337_v11 }
 0xd4e   :  { %v1617_v13 = vpop.f32.mrf.mxu0 }
 0xd50   :  { %v1878_v57 = vpop.f32.mrf.mxu0 }
 0xd51   :  { %v1840_v17 = vpop.f32.mrf.mxu1 }
 0xd53   :  { %v1841_v18 = vpop.f32.mrf.mxu1 }
 0xd54   :  { %v1842_v19 = vadd.f32 %v1841_v18, %v1840_v17 }
 0xd56   :  { %v1618_v20 = vadd.f32 %v1842_v19, %v1617_v13 }
 0xd58   :  { %v1621_v21 = vsel %vm1116_vm9, %v1618_v20, 0.0  ;;  %v1629_v14 = vmul.f32 %v1618_v20, %v1618_v20 }
 0xd59   :  { %v1622_v60 = vrot.slane %v1621_v21, 4 }
 0xd5a   :  { %v1630_v56 = vsel %vm1116_vm9, %v1629_v14, 0.0 }
 0xd5b   :  { %v1623_v40 = vadd.f32 %v1622_v60, %v1621_v21  ;;  %v1631_v43 = vrot.slane %v1630_v56, 4 }
 0xd5d   :  { %v1624_v42 = vrot.slane %v1623_v40, 2  ;;  %v1632_v44 = vadd.f32 %v1631_v43, %v1630_v56 }
 0xd5f   :  { %v1625_v45 = vadd.f32 %v1624_v42, %v1623_v40  ;;  %v1633_v46 = vrot.slane %v1632_v44, 2 }
 0xd61   :  { %v1626_v47 = vrot.slane %v1625_v45, 1  ;;  %v1634_v48 = vadd.f32 %v1633_v46, %v1632_v44 }
 0xd63   :  { %v1627_v49 = vadd.f32 %v1626_v47, %v1625_v45  ;;  %v1635_v50 = vrot.slane %v1634_v48, 1 }
 0xd65   :  { %v1628_v51 = vmul.f32 0.5, %v1627_v49  ;;  %v1636_v52 = vadd.f32 %v1635_v50, %v1634_v48 }
 0xd67   :  { %v1637_v53 = vmul.f32 0.5, %v1636_v52  ;;  %v1638_v54 = vmul.f32 %v1628_v51, %v1628_v51 }
 0xd69   :  { %v1639_v55 = vsub.f32 %v1637_v53, %v1638_v54 }
 0xd6b   :  { %v1640_v58 = vmax.f32 %v1639_v55, 0.0 }
 0xd6d   :  { %v1641_v59 = vadd.f32 1e-05, %v1640_v58 }
 0xd6f   :  { %1943 = vrsqrt.f32 %v1641_v59 }
 0xd7c   :  { %v1944_v61 = vpop.eup %1943 }
 0xd7d   :  { %1644 = vrot.lane.b32.xlu0 %v1944_v61, %s1978_s18 }
 0xdef   :  { %v1645_v63 = vpop.permute.xlu0 %1644 }
 0xdf0   :  { %v1647_v0 = vmul.f32 %v1645_v63, %v1340_v62 }
 0xdf2   :  { %1649 = vrot.lane.b32.xlu1 %v1647_v0, %s1979_s1  ;;  %v1661_v1 = vrot.slane %v1647_v0, %v2143_v37 }
 0xdf6   :  { %1663 = vrot.lane.b32.xlu1 %v1661_v1, %s1979_s1 }
 0xe64   :  { %v1650_v2 = vpop.permute.xlu1 %1649 }
 0xe65   :  { %v1652_v4 = vmul.f32 %v1650_v2, %v1628_v51 }
 0xe67   :  { %1654 = vrot.lane.b32.xlu0 %v1652_v4, %s1978_s18 }
 0xe68   :  { %v1664_v7 = vpop.permute.xlu1 %1663 }
 0xe69   :  { %v1666_v8 = vmul.f32 %v1664_v7, %v1618_v20 }
 0xed9   :  { %v1655_v35 = vpop.permute.xlu0 %1654 }
 0xeda   :  { %v1657_v5 = vsub.f32 %v1341_v3, %v1655_v35 }
 0xedc   :  { %v1670_v6 = vrot.slane %v1657_v5, %v2143_v37 }
 0xede   :  { %1672 = vrot.lane.b32.xlu0 %v1670_v6, %s1979_s1 }
 0xf50   :  { %v1673_v10 = vpop.permute.xlu0 %1672 }
 0xf51   :  { %v1675_v9 = vadd.f32 %v1673_v10, %v1666_v8 }
 0xf53   :  { %v1676_v25 = vmax.f32 %v1675_v9, 0.0 }
 0xf55   :  { %1677 = vst.msk [vmem:[#allocation4] sm:$0x3] %vm1116_vm9, %v1676_v25 }
 0xf56   :  { %1956 = shalt.err (!%p1953_p4)
}
 0xf57   :  { %1687 = dma.vmem_to_hbm [thread:$0]  %s1685_s2, 32, %s2628_s5, [#allocation5]  }
 0xf58   :  { %1967 = dma.done.wait [#allocation5], 32  }
 0xf59   :  { %1968 = vsyncadd [#allocation5], 4294967264 }
 0xf5a   :  { %1691 = vsyncpa [#allocation5], 1 }
 0xf5b   :  { %1692 = vsyncmov [#allocation3] }
 0xf5e   :  { %s1693_s25 = vpop.sfrf %1692 }
 0xf5f   :  { %p1762_p5 = scmp.ne.s32.totalorder %s1693_s25, 0 }
 0xf61   :  { %1697 = shalt.err (%p1762_p5)  }

</bundles_post_ra>
